<compile_context>
chip_gen: v6e
topology: v6e:2x2x1
jax: 0.10.0
libtpu: 0.0.40
codegen_flags: <defaults>
</compile_context>

<pallas_src>
import jax
import jax.numpy as jnp
from jax import lax
from jax.experimental import pallas as pl
from jax.experimental.pallas import tpu as pltpu

# ---- small synthetic "roberta" config ---------------------------------------
VOCAB = 50
B = 2            # batch
S = 8            # sequence length
H = 32           # hidden size
NH = 2           # attention heads
DH = H // NH     # head dim
FFN = 64         # intermediate size
LAYERS = 2
NUM_CLASSES = 2
LN_EPS = 1e-5
ATTN_SCALE = 1.0 / (DH ** 0.5)


def _layernorm(x, g, b):
    """LayerNorm over the last dim; x:[M,H], g,b:[1,H]."""
    mu = jnp.mean(x, axis=-1, keepdims=True)
    xc = x - mu
    var = jnp.mean(xc * xc, axis=-1, keepdims=True)
    return xc * lax.rsqrt(var + LN_EPS) * g + b


def _ditto_kernel(x_ref, emb_g_ref, emb_b_ref,
                  wqkv_ref, bqkv_ref, wo_ref, bo_ref, ln1g_ref, ln1b_ref,
                  w1_ref, b1_ref, w2_ref, b2_ref, ln2g_ref, ln2b_ref,
                  fcw_ref, fcb_ref,
                  out_ref,
                  qkv_scratch, ctx_scratch, logit_scratch):
    """Whole encoder forward, VMEM-resident.

    x_ref       : [B*S, H]  word+positional embeddings
    w*_ref      : per-layer weights stacked on a leading LAYERS axis
    out_ref     : [B, NUM_CLASSES] logits
    qkv_scratch : [B*S, 3H] fused QKV projection
    ctx_scratch : [B*S, H]  merged attention context
    logit_scratch: [B*S, NUM_CLASSES] per-token classifier output (CLS rows picked out)
    """
    x = _layernorm(x_ref[...], emb_g_ref[...], emb_b_ref[...])          # [B*S, H]

    for li in range(LAYERS):  # static unroll (LAYERS = 2)
        # ---- fused Q/K/V projection: one MXU pass, result kept in VMEM scratch ----
        qkv_scratch[...] = (
            jnp.dot(x, wqkv_ref[li], preferred_element_type=jnp.float32) + bqkv_ref[li]
        )

        # ---- multi-head self-attention, all (batch, head) pairs unrolled in-kernel ----
        # TODO(synk): no attention_mask — the reference calls self.bert(x1) with token IDs
        # only (default all-ones mask), so no masking is applied here either.
        for b in range(B):
            r0, r1 = b * S, (b + 1) * S
            for h in range(NH):
                c0, c1 = h * DH, (h + 1) * DH
                qs = qkv_scratch[r0:r1, 0 * H + c0:0 * H + c1]           # [S, DH]
                ks = qkv_scratch[r0:r1, 1 * H + c0:1 * H + c1]
                vs = qkv_scratch[r0:r1, 2 * H + c0:2 * H + c1]
                s = lax.dot_general(qs, ks, (((1,), (1,)), ((), ())),
                                    preferred_element_type=jnp.float32) * ATTN_SCALE
                s = s - jnp.max(s, axis=-1, keepdims=True)
                p = jnp.exp(s)
                p = p * pl.reciprocal(jnp.sum(p, axis=-1, keepdims=True), approx=True)
                ctx_scratch[r0:r1, c0:c1] = jnp.dot(
                    p, vs, preferred_element_type=jnp.float32)

        # ---- output projection + residual + post-LN (fused) ----
        attn_out = (jnp.dot(ctx_scratch[...], wo_ref[li],
                            preferred_element_type=jnp.float32) + bo_ref[li])
        x = _layernorm(x + attn_out, ln1g_ref[li], ln1b_ref[li])

        # ---- FFN (GELU) + residual + post-LN; [B*S, FFN] never leaves VMEM ----
        ffn = jnp.dot(x, w1_ref[li], preferred_element_type=jnp.float32) + b1_ref[li]
        # NOTE: tanh-approx GELU (PyTorch / HF RoBERTa use the exact erf form; tiny
        # numeric divergence, kept because the tanh path lowers on every TPU generation).
        ffn = jax.nn.gelu(ffn)
        ffn = jnp.dot(ffn, w2_ref[li], preferred_element_type=jnp.float32) + b2_ref[li]
        x = _layernorm(x + ffn, ln2g_ref[li], ln2b_ref[li])

    # ---- classifier on every token row, then pick the [CLS] row per batch ----
    logit_scratch[...] = (jnp.dot(x, fcw_ref[...],
                                  preferred_element_type=jnp.float32) + fcb_ref[...])
    for b in range(B):
        out_ref[b:b + 1, :] = logit_scratch[b * S:b * S + 1, :]


# ---- deterministic parameter init -------------------------------------------
def init_params(key):
    def norm(k, shape, scale=0.02):
        return scale * jax.random.normal(k, shape, dtype=jnp.float32)

    keys = jax.random.split(key, 3 + LAYERS)
    wqkv, wo, w1, w2 = [], [], [], []
    for li in range(LAYERS):
        lk = jax.random.split(keys[3 + li], 4)
        wqkv.append(norm(lk[0], (H, 3 * H)))   # fused q|k|v projection
        wo.append(norm(lk[1], (H, H)))
        w1.append(norm(lk[2], (H, FFN)))
        w2.append(norm(lk[3], (FFN, H)))

    return {
        "word_emb": norm(keys[0], (VOCAB, H)),
        "pos_emb": norm(keys[1], (S, H)),
        "emb_ln_g": jnp.ones((1, H), jnp.float32),
        "emb_ln_b": jnp.zeros((1, H), jnp.float32),
        "wqkv": jnp.stack(wqkv),                                  # [L, H, 3H]
        "bqkv": jnp.zeros((LAYERS, 1, 3 * H), jnp.float32),
        "wo": jnp.stack(wo),                                      # [L, H, H]
        "bo": jnp.zeros((LAYERS, 1, H), jnp.float32),
        "ln1_g": jnp.ones((LAYERS, 1, H), jnp.float32),
        "ln1_b": jnp.zeros((LAYERS, 1, H), jnp.float32),
        "w1": jnp.stack(w1),                                      # [L, H, FFN]
        "b1": jnp.zeros((LAYERS, 1, FFN), jnp.float32),
        "w2": jnp.stack(w2),                                      # [L, FFN, H]
        "b2": jnp.zeros((LAYERS, 1, H), jnp.float32),
        "ln2_g": jnp.ones((LAYERS, 1, H), jnp.float32),
        "ln2_b": jnp.zeros((LAYERS, 1, H), jnp.float32),
        "fc_w": norm(keys[2], (H, NUM_CLASSES)),
        "fc_b": jnp.zeros((1, NUM_CLASSES), jnp.float32),
    }


# ---- forward: bert(x1)[0][:, 0, :] -> fc -------------------------------------
def ditto_forward(params, x1):
    b, s = x1.shape
    # embedding gather + positional add: plain-JAX glue (cheap, data-dependent gather)
    emb = jnp.take(params["word_emb"], x1, axis=0) + params["pos_emb"][None, :s, :]
    x = emb.reshape(b * s, H).astype(jnp.float32)

    kernel_args = (
        x,
        params["emb_ln_g"], params["emb_ln_b"],
        params["wqkv"], params["bqkv"],
        params["wo"], params["bo"],
        params["ln1_g"], params["ln1_b"],
        params["w1"], params["b1"],
        params["w2"], params["b2"],
        params["ln2_g"], params["ln2_b"],
        params["fc_w"], params["fc_b"],
    )
    vmem = pl.BlockSpec(memory_space=pltpu.MemorySpace.VMEM)
    return pl.pallas_call(
        _ditto_kernel,
        out_shape=jax.ShapeDtypeStruct((b, NUM_CLASSES), jnp.float32),
        in_specs=[vmem] * len(kernel_args),
        out_specs=vmem,
        scratch_shapes=[
            pltpu.VMEM((b * s, 3 * H), jnp.float32),      # fused QKV
            pltpu.VMEM((b * s, H), jnp.float32),          # merged attention context
            pltpu.VMEM((b * s, NUM_CLASSES), jnp.float32),  # per-token logits
        ],
    )(*kernel_args)


if __name__ == "__main__":
    key = jax.random.PRNGKey(0)
    pkey, xkey = jax.random.split(key)
    params = init_params(pkey)
    x1 = jax.random.randint(xkey, (B, S), 0, VOCAB, dtype=jnp.int32)

    pred = jax.jit(ditto_forward)(params, x1)
    pred = jax.block_until_ready(pred)
    assert pred.shape == (B, NUM_CLASSES), pred.shape
    assert jnp.all(jnp.isfinite(pred))
    print("KERNEL_OK")
</pallas_src>

<mosaic_0001>
module attributes {stable_mosaic.version = 11 : i64} {
  func.func @_ditto_kernel(%arg0: memref<16x32xf32, #tpu.memory_space<vmem>>, %arg1: memref<1x32xf32, #tpu.memory_space<vmem>>, %arg2: memref<1x32xf32, #tpu.memory_space<vmem>>, %arg3: memref<2x32x96xf32, #tpu.memory_space<vmem>>, %arg4: memref<2x1x96xf32, #tpu.memory_space<vmem>>, %arg5: memref<2x32x32xf32, #tpu.memory_space<vmem>>, %arg6: memref<2x1x32xf32, #tpu.memory_space<vmem>>, %arg7: memref<2x1x32xf32, #tpu.memory_space<vmem>>, %arg8: memref<2x1x32xf32, #tpu.memory_space<vmem>>, %arg9: memref<2x32x64xf32, #tpu.memory_space<vmem>>, %arg10: memref<2x1x64xf32, #tpu.memory_space<vmem>>, %arg11: memref<2x64x32xf32, #tpu.memory_space<vmem>>, %arg12: memref<2x1x32xf32, #tpu.memory_space<vmem>>, %arg13: memref<2x1x32xf32, #tpu.memory_space<vmem>>, %arg14: memref<2x1x32xf32, #tpu.memory_space<vmem>>, %arg15: memref<32x2xf32, #tpu.memory_space<vmem>>, %arg16: memref<1x2xf32, #tpu.memory_space<vmem>>, %arg17: memref<2x2xf32, #tpu.memory_space<vmem>>, %arg18: memref<16x96xf32, #tpu.memory_space<vmem>>, %arg19: memref<16x32xf32, #tpu.memory_space<vmem>>, %arg20: memref<16x2xf32, #tpu.memory_space<vmem>>) attributes {dimension_semantics = [], scalar_prefetch = 0 : i64, scratch_operands = 3 : i64, tpu.core_type = #tpu.core_type<tc>} {
    %c0 = arith.constant 0 : index
    %c0_0 = arith.constant 0 : index
    %0 = vector.load %arg0[%c0, %c0_0] : memref<16x32xf32, #tpu.memory_space<vmem>>, vector<16x32xf32>
    %c0_1 = arith.constant 0 : index
    %c0_2 = arith.constant 0 : index
    %1 = vector.load %arg1[%c0_1, %c0_2] : memref<1x32xf32, #tpu.memory_space<vmem>>, vector<1x32xf32>
    %c0_3 = arith.constant 0 : index
    %c0_4 = arith.constant 0 : index
    %2 = vector.load %arg2[%c0_3, %c0_4] : memref<1x32xf32, #tpu.memory_space<vmem>>, vector<1x32xf32>
    %cst = arith.constant dense<0.000000e+00> : vector<16xf32>
    %3 = vector.multi_reduction <add>, %0, %cst [1] : vector<16x32xf32> to vector<16xf32>
    %4 = vector.shape_cast %3 : vector<16xf32> to vector<16x1xf32>
    %cst_5 = arith.constant 3.200000e+01 : f32
    %5 = vector.broadcast %cst_5 : f32 to vector<16x1xf32>
    %6 = arith.divf %4, %5 : vector<16x1xf32>
    %7 = vector.broadcast %6 : vector<16x1xf32> to vector<16x32xf32>
    %8 = arith.subf %0, %7 : vector<16x32xf32>
    %9 = arith.mulf %8, %8 : vector<16x32xf32>
    %cst_6 = arith.constant dense<0.000000e+00> : vector<16xf32>
    %10 = vector.multi_reduction <add>, %9, %cst_6 [1] : vector<16x32xf32> to vector<16xf32>
    %11 = vector.shape_cast %10 : vector<16xf32> to vector<16x1xf32>
    %cst_7 = arith.constant 3.200000e+01 : f32
    %12 = vector.broadcast %cst_7 : f32 to vector<16x1xf32>
    %13 = arith.divf %11, %12 : vector<16x1xf32>
    %cst_8 = arith.constant 9.99999974E-6 : f32
    %14 = vector.broadcast %cst_8 : f32 to vector<16x1xf32>
    %15 = arith.addf %13, %14 : vector<16x1xf32>
    %16 = math.rsqrt %15 : vector<16x1xf32>
    %17 = vector.broadcast %16 : vector<16x1xf32> to vector<16x32xf32>
    %18 = arith.mulf %8, %17 : vector<16x32xf32>
    %19 = vector.broadcast %1 : vector<1x32xf32> to vector<16x32xf32>
    %20 = arith.mulf %18, %19 : vector<16x32xf32>
    %21 = vector.broadcast %2 : vector<1x32xf32> to vector<16x32xf32>
    %22 = arith.addf %20, %21 : vector<16x32xf32>
    %c0_9 = arith.constant 0 : index
    %c0_10 = arith.constant 0 : index
    %c0_11 = arith.constant 0 : index
    %23 = vector.load %arg3[%c0_9, %c0_10, %c0_11] : memref<2x32x96xf32, #tpu.memory_space<vmem>>, vector<1x32x96xf32>
    %24 = vector.shape_cast %23 : vector<1x32x96xf32> to vector<32x96xf32>
    %cst_12 = arith.constant dense<0.000000e+00> : vector<16x96xf32>
    %25 = tpu.matmul %22, %24, %cst_12 {dimension_numbers = #tpu.dot_dimension_numbers<[1], [0], [0], [1], [0, 0, 1, 1], [], []>} : vector<16x32xf32>, vector<32x96xf32>, vector<16x96xf32> -> vector<16x96xf32>
    %c0_13 = arith.constant 0 : index
    %c0_14 = arith.constant 0 : index
    %c0_15 = arith.constant 0 : index
    %26 = vector.load %arg4[%c0_13, %c0_14, %c0_15] : memref<2x1x96xf32, #tpu.memory_space<vmem>>, vector<1x1x96xf32>
    %27 = vector.shape_cast %26 : vector<1x1x96xf32> to vector<1x96xf32>
    %28 = vector.broadcast %27 : vector<1x96xf32> to vector<16x96xf32>
    %29 = arith.addf %25, %28 : vector<16x96xf32>
    %c0_16 = arith.constant 0 : index
    %c0_17 = arith.constant 0 : index
    %30 = vector.load %arg18[%c0_16, %c0_17] : memref<16x96xf32, #tpu.memory_space<vmem>>, vector<16x96xf32>
    tpu.vector_store %arg18[%c0_16, %c0_17], %29 {strides = array<i32>} : memref<16x96xf32, #tpu.memory_space<vmem>>, vector<16x96xf32>,
    %c0_18 = arith.constant 0 : index
    %c0_19 = arith.constant 0 : index
    %31 = vector.load %arg18[%c0_18, %c0_19] : memref<16x96xf32, #tpu.memory_space<vmem>>, vector<8x16xf32>
    %c0_20 = arith.constant 0 : index
    %c32 = arith.constant 32 : index
    %32 = vector.load %arg18[%c0_20, %c32] : memref<16x96xf32, #tpu.memory_space<vmem>>, vector<8x16xf32>
    %c0_21 = arith.constant 0 : index
    %c64 = arith.constant 64 : index
    %33 = vector.load %arg18[%c0_21, %c64] : memref<16x96xf32, #tpu.memory_space<vmem>>, vector<8x16xf32>
    %cst_22 = arith.constant dense<0.000000e+00> : vector<8x8xf32>
    %34 = tpu.matmul %31, %32, %cst_22 {dimension_numbers = #tpu.dot_dimension_numbers<[1], [1], [0], [0], [0, 0, 1, 0], [], []>} : vector<8x16xf32>, vector<8x16xf32>, vector<8x8xf32> -> vector<8x8xf32>
    %cst_23 = arith.constant 2.500000e-01 : f32
    %35 = vector.broadcast %cst_23 : f32 to vector<8x8xf32>
    %36 = arith.mulf %34, %35 : vector<8x8xf32>
    %cst_24 = arith.constant dense<0xFF800000> : vector<8xf32>
    %37 = vector.multi_reduction <maximumf>, %36, %cst_24 [1] : vector<8x8xf32> to vector<8xf32>
    %38 = vector.shape_cast %37 : vector<8xf32> to vector<8x1xf32>
    %39 = vector.broadcast %38 : vector<8x1xf32> to vector<8x8xf32>
    %40 = arith.subf %36, %39 : vector<8x8xf32>
    %41 = math.exp %40 : vector<8x8xf32>
    %cst_25 = arith.constant dense<0.000000e+00> : vector<8xf32>
    %42 = vector.multi_reduction <add>, %41, %cst_25 [1] : vector<8x8xf32> to vector<8xf32>
    %43 = vector.shape_cast %42 : vector<8xf32> to vector<8x1xf32>
    %44 = tpu.reciprocal %43 {approx = true} : vector<8x1xf32> -> vector<8x1xf32>
    %45 = vector.broadcast %44 : vector<8x1xf32> to vector<8x8xf32>
    %46 = arith.mulf %41, %45 : vector<8x8xf32>
    %cst_26 = arith.constant dense<0.000000e+00> : vector<8x16xf32>
    %47 = tpu.matmul %46, %33, %cst_26 {dimension_numbers = #tpu.dot_dimension_numbers<[1], [0], [0], [1], [0, 0, 1, 1], [], []>} : vector<8x8xf32>, vector<8x16xf32>, vector<8x16xf32> -> vector<8x16xf32>
    %c0_27 = arith.constant 0 : index
    %c0_28 = arith.constant 0 : index
    %48 = vector.load %arg19[%c0_27, %c0_28] : memref<16x32xf32, #tpu.memory_space<vmem>>, vector<8x16xf32>
    tpu.vector_store %arg19[%c0_27, %c0_28], %47 {strides = array<i32>} : memref<16x32xf32, #tpu.memory_space<vmem>>, vector<8x16xf32>,
    %c0_29 = arith.constant 0 : index
    %c16 = arith.constant 16 : index
    %49 = vector.load %arg18[%c0_29, %c16] : memref<16x96xf32, #tpu.memory_space<vmem>>, vector<8x16xf32>
    %c0_30 = arith.constant 0 : index
    %c48 = arith.constant 48 : index
    %50 = vector.load %arg18[%c0_30, %c48] : memref<16x96xf32, #tpu.memory_space<vmem>>, vector<8x16xf32>
    %c0_31 = arith.constant 0 : index
    %c80 = arith.constant 80 : index
    %51 = vector.load %arg18[%c0_31, %c80] : memref<16x96xf32, #tpu.memory_space<vmem>>, vector<8x16xf32>
    %cst_32 = arith.constant dense<0.000000e+00> : vector<8x8xf32>
    %52 = tpu.matmul %49, %50, %cst_32 {dimension_numbers = #tpu.dot_dimension_numbers<[1], [1], [0], [0], [0, 0, 1, 0], [], []>} : vector<8x16xf32>, vector<8x16xf32>, vector<8x8xf32> -> vector<8x8xf32>
    %cst_33 = arith.constant 2.500000e-01 : f32
    %53 = vector.broadcast %cst_33 : f32 to vector<8x8xf32>
    %54 = arith.mulf %52, %53 : vector<8x8xf32>
    %cst_34 = arith.constant dense<0xFF800000> : vector<8xf32>
    %55 = vector.multi_reduction <maximumf>, %54, %cst_34 [1] : vector<8x8xf32> to vector<8xf32>
    %56 = vector.shape_cast %55 : vector<8xf32> to vector<8x1xf32>
    %57 = vector.broadcast %56 : vector<8x1xf32> to vector<8x8xf32>
    %58 = arith.subf %54, %57 : vector<8x8xf32>
    %59 = math.exp %58 : vector<8x8xf32>
    %cst_35 = arith.constant dense<0.000000e+00> : vector<8xf32>
    %60 = vector.multi_reduction <add>, %59, %cst_35 [1] : vector<8x8xf32> to vector<8xf32>
    %61 = vector.shape_cast %60 : vector<8xf32> to vector<8x1xf32>
    %62 = tpu.reciprocal %61 {approx = true} : vector<8x1xf32> -> vector<8x1xf32>
    %63 = vector.broadcast %62 : vector<8x1xf32> to vector<8x8xf32>
    %64 = arith.mulf %59, %63 : vector<8x8xf32>
    %cst_36 = arith.constant dense<0.000000e+00> : vector<8x16xf32>
    %65 = tpu.matmul %64, %51, %cst_36 {dimension_numbers = #tpu.dot_dimension_numbers<[1], [0], [0], [1], [0, 0, 1, 1], [], []>} : vector<8x8xf32>, vector<8x16xf32>, vector<8x16xf32> -> vector<8x16xf32>
    %c0_37 = arith.constant 0 : index
    %c16_38 = arith.constant 16 : index
    %66 = vector.load %arg19[%c0_37, %c16_38] : memref<16x32xf32, #tpu.memory_space<vmem>>, vector<8x16xf32>
    tpu.vector_store %arg19[%c0_37, %c16_38], %65 {strides = array<i32>} : memref<16x32xf32, #tpu.memory_space<vmem>>, vector<8x16xf32>,
    %c8 = arith.constant 8 : index
    %c0_39 = arith.constant 0 : index
    %67 = vector.load %arg18[%c8, %c0_39] : memref<16x96xf32, #tpu.memory_space<vmem>>, vector<8x16xf32>
    %c8_40 = arith.constant 8 : index
    %c32_41 = arith.constant 32 : index
    %68 = vector.load %arg18[%c8_40, %c32_41] : memref<16x96xf32, #tpu.memory_space<vmem>>, vector<8x16xf32>
    %c8_42 = arith.constant 8 : index
    %c64_43 = arith.constant 64 : index
    %69 = vector.load %arg18[%c8_42, %c64_43] : memref<16x96xf32, #tpu.memory_space<vmem>>, vector<8x16xf32>
    %cst_44 = arith.constant dense<0.000000e+00> : vector<8x8xf32>
    %70 = tpu.matmul %67, %68, %cst_44 {dimension_numbers = #tpu.dot_dimension_numbers<[1], [1], [0], [0], [0, 0, 1, 0], [], []>} : vector<8x16xf32>, vector<8x16xf32>, vector<8x8xf32> -> vector<8x8xf32>
    %cst_45 = arith.constant 2.500000e-01 : f32
    %71 = vector.broadcast %cst_45 : f32 to vector<8x8xf32>
    %72 = arith.mulf %70, %71 : vector<8x8xf32>
    %cst_46 = arith.constant dense<0xFF800000> : vector<8xf32>
    %73 = vector.multi_reduction <maximumf>, %72, %cst_46 [1] : vector<8x8xf32> to vector<8xf32>
    %74 = vector.shape_cast %73 : vector<8xf32> to vector<8x1xf32>
    %75 = vector.broadcast %74 : vector<8x1xf32> to vector<8x8xf32>
    %76 = arith.subf %72, %75 : vector<8x8xf32>
    %77 = math.exp %76 : vector<8x8xf32>
    %cst_47 = arith.constant dense<0.000000e+00> : vector<8xf32>
    %78 = vector.multi_reduction <add>, %77, %cst_47 [1] : vector<8x8xf32> to vector<8xf32>
    %79 = vector.shape_cast %78 : vector<8xf32> to vector<8x1xf32>
    %80 = tpu.reciprocal %79 {approx = true} : vector<8x1xf32> -> vector<8x1xf32>
    %81 = vector.broadcast %80 : vector<8x1xf32> to vector<8x8xf32>
    %82 = arith.mulf %77, %81 : vector<8x8xf32>
    %cst_48 = arith.constant dense<0.000000e+00> : vector<8x16xf32>
    %83 = tpu.matmul %82, %69, %cst_48 {dimension_numbers = #tpu.dot_dimension_numbers<[1], [0], [0], [1], [0, 0, 1, 1], [], []>} : vector<8x8xf32>, vector<8x16xf32>, vector<8x16xf32> -> vector<8x16xf32>
    %c8_49 = arith.constant 8 : index
    %c0_50 = arith.constant 0 : index
    %84 = vector.load %arg19[%c8_49, %c0_50] : memref<16x32xf32, #tpu.memory_space<vmem>>, vector<8x16xf32>
    tpu.vector_store %arg19[%c8_49, %c0_50], %83 {strides = array<i32>} : memref<16x32xf32, #tpu.memory_space<vmem>>, vector<8x16xf32>,
    %c8_51 = arith.constant 8 : index
    %c16_52 = arith.constant 16 : index
    %85 = vector.load %arg18[%c8_51, %c16_52] : memref<16x96xf32, #tpu.memory_space<vmem>>, vector<8x16xf32>
    %c8_53 = arith.constant 8 : index
    %c48_54 = arith.constant 48 : index
    %86 = vector.load %arg18[%c8_53, %c48_54] : memref<16x96xf32, #tpu.memory_space<vmem>>, vector<8x16xf32>
    %c8_55 = arith.constant 8 : index
    %c80_56 = arith.constant 80 : index
    %87 = vector.load %arg18[%c8_55, %c80_56] : memref<16x96xf32, #tpu.memory_space<vmem>>, vector<8x16xf32>
    %cst_57 = arith.constant dense<0.000000e+00> : vector<8x8xf32>
    %88 = tpu.matmul %85, %86, %cst_57 {dimension_numbers = #tpu.dot_dimension_numbers<[1], [1], [0], [0], [0, 0, 1, 0], [], []>} : vector<8x16xf32>, vector<8x16xf32>, vector<8x8xf32> -> vector<8x8xf32>
    %cst_58 = arith.constant 2.500000e-01 : f32
    %89 = vector.broadcast %cst_58 : f32 to vector<8x8xf32>
    %90 = arith.mulf %88, %89 : vector<8x8xf32>
    %cst_59 = arith.constant dense<0xFF800000> : vector<8xf32>
    %91 = vector.multi_reduction <maximumf>, %90, %cst_59 [1] : vector<8x8xf32> to vector<8xf32>
    %92 = vector.shape_cast %91 : vector<8xf32> to vector<8x1xf32>
    %93 = vector.broadcast %92 : vector<8x1xf32> to vector<8x8xf32>
    %94 = arith.subf %90, %93 : vector<8x8xf32>
    %95 = math.exp %94 : vector<8x8xf32>
    %cst_60 = arith.constant dense<0.000000e+00> : vector<8xf32>
    %96 = vector.multi_reduction <add>, %95, %cst_60 [1] : vector<8x8xf32> to vector<8xf32>
    %97 = vector.shape_cast %96 : vector<8xf32> to vector<8x1xf32>
    %98 = tpu.reciprocal %97 {approx = true} : vector<8x1xf32> -> vector<8x1xf32>
    %99 = vector.broadcast %98 : vector<8x1xf32> to vector<8x8xf32>
    %100 = arith.mulf %95, %99 : vector<8x8xf32>
    %cst_61 = arith.constant dense<0.000000e+00> : vector<8x16xf32>
    %101 = tpu.matmul %100, %87, %cst_61 {dimension_numbers = #tpu.dot_dimension_numbers<[1], [0], [0], [1], [0, 0, 1, 1], [], []>} : vector<8x8xf32>, vector<8x16xf32>, vector<8x16xf32> -> vector<8x16xf32>
    %c8_62 = arith.constant 8 : index
    %c16_63 = arith.constant 16 : index
    %102 = vector.load %arg19[%c8_62, %c16_63] : memref<16x32xf32, #tpu.memory_space<vmem>>, vector<8x16xf32>
    tpu.vector_store %arg19[%c8_62, %c16_63], %101 {strides = array<i32>} : memref<16x32xf32, #tpu.memory_space<vmem>>, vector<8x16xf32>,
    %c0_64 = arith.constant 0 : index
    %c0_65 = arith.constant 0 : index
    %103 = vector.load %arg19[%c0_64, %c0_65] : memref<16x32xf32, #tpu.memory_space<vmem>>, vector<16x32xf32>
    %c0_66 = arith.constant 0 : index
    %c0_67 = arith.constant 0 : index
    %c0_68 = arith.constant 0 : index
    %104 = vector.load %arg5[%c0_66, %c0_67, %c0_68] : memref<2x32x32xf32, #tpu.memory_space<vmem>>, vector<1x32x32xf32>
    %105 = vector.shape_cast %104 : vector<1x32x32xf32> to vector<32x32xf32>
    %cst_69 = arith.constant dense<0.000000e+00> : vector<16x32xf32>
    %106 = tpu.matmul %103, %105, %cst_69 {dimension_numbers = #tpu.dot_dimension_numbers<[1], [0], [0], [1], [0, 0, 1, 1], [], []>} : vector<16x32xf32>, vector<32x32xf32>, vector<16x32xf32> -> vector<16x32xf32>
    %c0_70 = arith.constant 0 : index
    %c0_71 = arith.constant 0 : index
    %c0_72 = arith.constant 0 : index
    %107 = vector.load %arg6[%c0_70, %c0_71, %c0_72] : memref<2x1x32xf32, #tpu.memory_space<vmem>>, vector<1x1x32xf32>
    %108 = vector.shape_cast %107 : vector<1x1x32xf32> to vector<1x32xf32>
    %109 = vector.broadcast %108 : vector<1x32xf32> to vector<16x32xf32>
    %110 = arith.addf %106, %109 : vector<16x32xf32>
    %111 = arith.addf %22, %110 : vector<16x32xf32>
    %c0_73 = arith.constant 0 : index
    %c0_74 = arith.constant 0 : index
    %c0_75 = arith.constant 0 : index
    %112 = vector.load %arg7[%c0_73, %c0_74, %c0_75] : memref<2x1x32xf32, #tpu.memory_space<vmem>>, vector<1x1x32xf32>
    %113 = vector.shape_cast %112 : vector<1x1x32xf32> to vector<1x32xf32>
    %c0_76 = arith.constant 0 : index
    %c0_77 = arith.constant 0 : index
    %c0_78 = arith.constant 0 : index
    %114 = vector.load %arg8[%c0_76, %c0_77, %c0_78] : memref<2x1x32xf32, #tpu.memory_space<vmem>>, vector<1x1x32xf32>
    %115 = vector.shape_cast %114 : vector<1x1x32xf32> to vector<1x32xf32>
    %cst_79 = arith.constant dense<0.000000e+00> : vector<16xf32>
    %116 = vector.multi_reduction <add>, %111, %cst_79 [1] : vector<16x32xf32> to vector<16xf32>
    %117 = vector.shape_cast %116 : vector<16xf32> to vector<16x1xf32>
    %cst_80 = arith.constant 3.200000e+01 : f32
    %118 = vector.broadcast %cst_80 : f32 to vector<16x1xf32>
    %119 = arith.divf %117, %118 : vector<16x1xf32>
    %120 = vector.broadcast %119 : vector<16x1xf32> to vector<16x32xf32>
    %121 = arith.subf %111, %120 : vector<16x32xf32>
    %122 = arith.mulf %121, %121 : vector<16x32xf32>
    %cst_81 = arith.constant dense<0.000000e+00> : vector<16xf32>
    %123 = vector.multi_reduction <add>, %122, %cst_81 [1] : vector<16x32xf32> to vector<16xf32>
    %124 = vector.shape_cast %123 : vector<16xf32> to vector<16x1xf32>
    %cst_82 = arith.constant 3.200000e+01 : f32
    %125 = vector.broadcast %cst_82 : f32 to vector<16x1xf32>
    %126 = arith.divf %124, %125 : vector<16x1xf32>
    %cst_83 = arith.constant 9.99999974E-6 : f32
    %127 = vector.broadcast %cst_83 : f32 to vector<16x1xf32>
    %128 = arith.addf %126, %127 : vector<16x1xf32>
    %129 = math.rsqrt %128 : vector<16x1xf32>
    %130 = vector.broadcast %129 : vector<16x1xf32> to vector<16x32xf32>
    %131 = arith.mulf %121, %130 : vector<16x32xf32>
    %132 = vector.broadcast %113 : vector<1x32xf32> to vector<16x32xf32>
    %133 = arith.mulf %131, %132 : vector<16x32xf32>
    %134 = vector.broadcast %115 : vector<1x32xf32> to vector<16x32xf32>
    %135 = arith.addf %133, %134 : vector<16x32xf32>
    %c0_84 = arith.constant 0 : index
    %c0_85 = arith.constant 0 : index
    %c0_86 = arith.constant 0 : index
    %136 = vector.load %arg9[%c0_84, %c0_85, %c0_86] : memref<2x32x64xf32, #tpu.memory_space<vmem>>, vector<1x32x64xf32>
    %137 = vector.shape_cast %136 : vector<1x32x64xf32> to vector<32x64xf32>
    %cst_87 = arith.constant dense<0.000000e+00> : vector<16x64xf32>
    %138 = tpu.matmul %135, %137, %cst_87 {dimension_numbers = #tpu.dot_dimension_numbers<[1], [0], [0], [1], [0, 0, 1, 1], [], []>} : vector<16x32xf32>, vector<32x64xf32>, vector<16x64xf32> -> vector<16x64xf32>
    %c0_88 = arith.constant 0 : index
    %c0_89 = arith.constant 0 : index
    %c0_90 = arith.constant 0 : index
    %139 = vector.load %arg10[%c0_88, %c0_89, %c0_90] : memref<2x1x64xf32, #tpu.memory_space<vmem>>, vector<1x1x64xf32>
    %140 = vector.shape_cast %139 : vector<1x1x64xf32> to vector<1x64xf32>
    %141 = vector.broadcast %140 : vector<1x64xf32> to vector<16x64xf32>
    %142 = arith.addf %138, %141 : vector<16x64xf32>
    %143 = arith.mulf %142, %142 : vector<16x64xf32>
    %144 = arith.mulf %142, %143 : vector<16x64xf32>
    %cst_91 = arith.constant 4.471500e-02 : f32
    %145 = vector.broadcast %cst_91 : f32 to vector<16x64xf32>
    %146 = arith.mulf %145, %144 : vector<16x64xf32>
    %147 = arith.addf %142, %146 : vector<16x64xf32>
    %cst_92 = arith.constant 0.797884583 : f32
    %148 = vector.broadcast %cst_92 : f32 to vector<16x64xf32>
    %149 = arith.mulf %148, %147 : vector<16x64xf32>
    %150 = math.tanh %149 : vector<16x64xf32>
    %cst_93 = arith.constant 1.000000e+00 : f32
    %151 = vector.broadcast %cst_93 : f32 to vector<16x64xf32>
    %152 = arith.addf %151, %150 : vector<16x64xf32>
    %cst_94 = arith.constant 5.000000e-01 : f32
    %153 = vector.broadcast %cst_94 : f32 to vector<16x64xf32>
    %154 = arith.mulf %153, %152 : vector<16x64xf32>
    %155 = arith.mulf %142, %154 : vector<16x64xf32>
    %c0_95 = arith.constant 0 : index
    %c0_96 = arith.constant 0 : index
    %c0_97 = arith.constant 0 : index
    %156 = vector.load %arg11[%c0_95, %c0_96, %c0_97] : memref<2x64x32xf32, #tpu.memory_space<vmem>>, vector<1x64x32xf32>
    %157 = vector.shape_cast %156 : vector<1x64x32xf32> to vector<64x32xf32>
    %cst_98 = arith.constant dense<0.000000e+00> : vector<16x32xf32>
    %158 = tpu.matmul %155, %157, %cst_98 {dimension_numbers = #tpu.dot_dimension_numbers<[1], [0], [0], [1], [0, 0, 1, 1], [], []>} : vector<16x64xf32>, vector<64x32xf32>, vector<16x32xf32> -> vector<16x32xf32>
    %c0_99 = arith.constant 0 : index
    %c0_100 = arith.constant 0 : index
    %c0_101 = arith.constant 0 : index
    %159 = vector.load %arg12[%c0_99, %c0_100, %c0_101] : memref<2x1x32xf32, #tpu.memory_space<vmem>>, vector<1x1x32xf32>
    %160 = vector.shape_cast %159 : vector<1x1x32xf32> to vector<1x32xf32>
    %161 = vector.broadcast %160 : vector<1x32xf32> to vector<16x32xf32>
    %162 = arith.addf %158, %161 : vector<16x32xf32>
    %163 = arith.addf %135, %162 : vector<16x32xf32>
    %c0_102 = arith.constant 0 : index
    %c0_103 = arith.constant 0 : index
    %c0_104 = arith.constant 0 : index
    %164 = vector.load %arg13[%c0_102, %c0_103, %c0_104] : memref<2x1x32xf32, #tpu.memory_space<vmem>>, vector<1x1x32xf32>
    %165 = vector.shape_cast %164 : vector<1x1x32xf32> to vector<1x32xf32>
    %c0_105 = arith.constant 0 : index
    %c0_106 = arith.constant 0 : index
    %c0_107 = arith.constant 0 : index
    %166 = vector.load %arg14[%c0_105, %c0_106, %c0_107] : memref<2x1x32xf32, #tpu.memory_space<vmem>>, vector<1x1x32xf32>
    %167 = vector.shape_cast %166 : vector<1x1x32xf32> to vector<1x32xf32>
    %cst_108 = arith.constant dense<0.000000e+00> : vector<16xf32>
    %168 = vector.multi_reduction <add>, %163, %cst_108 [1] : vector<16x32xf32> to vector<16xf32>
    %169 = vector.shape_cast %168 : vector<16xf32> to vector<16x1xf32>
    %cst_109 = arith.constant 3.200000e+01 : f32
    %170 = vector.broadcast %cst_109 : f32 to vector<16x1xf32>
    %171 = arith.divf %169, %170 : vector<16x1xf32>
    %172 = vector.broadcast %171 : vector<16x1xf32> to vector<16x32xf32>
    %173 = arith.subf %163, %172 : vector<16x32xf32>
    %174 = arith.mulf %173, %173 : vector<16x32xf32>
    %cst_110 = arith.constant dense<0.000000e+00> : vector<16xf32>
    %175 = vector.multi_reduction <add>, %174, %cst_110 [1] : vector<16x32xf32> to vector<16xf32>
    %176 = vector.shape_cast %175 : vector<16xf32> to vector<16x1xf32>
    %cst_111 = arith.constant 3.200000e+01 : f32
    %177 = vector.broadcast %cst_111 : f32 to vector<16x1xf32>
    %178 = arith.divf %176, %177 : vector<16x1xf32>
    %cst_112 = arith.constant 9.99999974E-6 : f32
    %179 = vector.broadcast %cst_112 : f32 to vector<16x1xf32>
    %180 = arith.addf %178, %179 : vector<16x1xf32>
    %181 = math.rsqrt %180 : vector<16x1xf32>
    %182 = vector.broadcast %181 : vector<16x1xf32> to vector<16x32xf32>
    %183 = arith.mulf %173, %182 : vector<16x32xf32>
    %184 = vector.broadcast %165 : vector<1x32xf32> to vector<16x32xf32>
    %185 = arith.mulf %183, %184 : vector<16x32xf32>
    %186 = vector.broadcast %167 : vector<1x32xf32> to vector<16x32xf32>
    %187 = arith.addf %185, %186 : vector<16x32xf32>
    %c1 = arith.constant 1 : index
    %c0_113 = arith.constant 0 : index
    %c0_114 = arith.constant 0 : index
    %188 = vector.load %arg3[%c1, %c0_113, %c0_114] : memref<2x32x96xf32, #tpu.memory_space<vmem>>, vector<1x32x96xf32>
    %189 = vector.shape_cast %188 : vector<1x32x96xf32> to vector<32x96xf32>
    %cst_115 = arith.constant dense<0.000000e+00> : vector<16x96xf32>
    %190 = tpu.matmul %187, %189, %cst_115 {dimension_numbers = #tpu.dot_dimension_numbers<[1], [0], [0], [1], [0, 0, 1, 1], [], []>} : vector<16x32xf32>, vector<32x96xf32>, vector<16x96xf32> -> vector<16x96xf32>
    %c1_116 = arith.constant 1 : index
    %c0_117 = arith.constant 0 : index
    %c0_118 = arith.constant 0 : index
    %191 = vector.load %arg4[%c1_116, %c0_117, %c0_118] : memref<2x1x96xf32, #tpu.memory_space<vmem>>, vector<1x1x96xf32>
    %192 = vector.shape_cast %191 : vector<1x1x96xf32> to vector<1x96xf32>
    %193 = vector.broadcast %192 : vector<1x96xf32> to vector<16x96xf32>
    %194 = arith.addf %190, %193 : vector<16x96xf32>
    %c0_119 = arith.constant 0 : index
    %c0_120 = arith.constant 0 : index
    %195 = vector.load %arg18[%c0_119, %c0_120] : memref<16x96xf32, #tpu.memory_space<vmem>>, vector<16x96xf32>
    tpu.vector_store %arg18[%c0_119, %c0_120], %194 {strides = array<i32>} : memref<16x96xf32, #tpu.memory_space<vmem>>, vector<16x96xf32>,
    %c0_121 = arith.constant 0 : index
    %c0_122 = arith.constant 0 : index
    %196 = vector.load %arg18[%c0_121, %c0_122] : memref<16x96xf32, #tpu.memory_space<vmem>>, vector<8x16xf32>
    %c0_123 = arith.constant 0 : index
    %c32_124 = arith.constant 32 : index
    %197 = vector.load %arg18[%c0_123, %c32_124] : memref<16x96xf32, #tpu.memory_space<vmem>>, vector<8x16xf32>
    %c0_125 = arith.constant 0 : index
    %c64_126 = arith.constant 64 : index
    %198 = vector.load %arg18[%c0_125, %c64_126] : memref<16x96xf32, #tpu.memory_space<vmem>>, vector<8x16xf32>
    %cst_127 = arith.constant dense<0.000000e+00> : vector<8x8xf32>
    %199 = tpu.matmul %196, %197, %cst_127 {dimension_numbers = #tpu.dot_dimension_numbers<[1], [1], [0], [0], [0, 0, 1, 0], [], []>} : vector<8x16xf32>, vector<8x16xf32>, vector<8x8xf32> -> vector<8x8xf32>
    %cst_128 = arith.constant 2.500000e-01 : f32
    %200 = vector.broadcast %cst_128 : f32 to vector<8x8xf32>
    %201 = arith.mulf %199, %200 : vector<8x8xf32>
    %cst_129 = arith.constant dense<0xFF800000> : vector<8xf32>
    %202 = vector.multi_reduction <maximumf>, %201, %cst_129 [1] : vector<8x8xf32> to vector<8xf32>
    %203 = vector.shape_cast %202 : vector<8xf32> to vector<8x1xf32>
    %204 = vector.broadcast %203 : vector<8x1xf32> to vector<8x8xf32>
    %205 = arith.subf %201, %204 : vector<8x8xf32>
    %206 = math.exp %205 : vector<8x8xf32>
    %cst_130 = arith.constant dense<0.000000e+00> : vector<8xf32>
    %207 = vector.multi_reduction <add>, %206, %cst_130 [1] : vector<8x8xf32> to vector<8xf32>
    %208 = vector.shape_cast %207 : vector<8xf32> to vector<8x1xf32>
    %209 = tpu.reciprocal %208 {approx = true} : vector<8x1xf32> -> vector<8x1xf32>
    %210 = vector.broadcast %209 : vector<8x1xf32> to vector<8x8xf32>
    %211 = arith.mulf %206, %210 : vector<8x8xf32>
    %cst_131 = arith.constant dense<0.000000e+00> : vector<8x16xf32>
    %212 = tpu.matmul %211, %198, %cst_131 {dimension_numbers = #tpu.dot_dimension_numbers<[1], [0], [0], [1], [0, 0, 1, 1], [], []>} : vector<8x8xf32>, vector<8x16xf32>, vector<8x16xf32> -> vector<8x16xf32>
    %c0_132 = arith.constant 0 : index
    %c0_133 = arith.constant 0 : index
    %213 = vector.load %arg19[%c0_132, %c0_133] : memref<16x32xf32, #tpu.memory_space<vmem>>, vector<8x16xf32>
    tpu.vector_store %arg19[%c0_132, %c0_133], %212 {strides = array<i32>} : memref<16x32xf32, #tpu.memory_space<vmem>>, vector<8x16xf32>,
    %c0_134 = arith.constant 0 : index
    %c16_135 = arith.constant 16 : index
    %214 = vector.load %arg18[%c0_134, %c16_135] : memref<16x96xf32, #tpu.memory_space<vmem>>, vector<8x16xf32>
    %c0_136 = arith.constant 0 : index
    %c48_137 = arith.constant 48 : index
    %215 = vector.load %arg18[%c0_136, %c48_137] : memref<16x96xf32, #tpu.memory_space<vmem>>, vector<8x16xf32>
    %c0_138 = arith.constant 0 : index
    %c80_139 = arith.constant 80 : index
    %216 = vector.load %arg18[%c0_138, %c80_139] : memref<16x96xf32, #tpu.memory_space<vmem>>, vector<8x16xf32>
    %cst_140 = arith.constant dense<0.000000e+00> : vector<8x8xf32>
    %217 = tpu.matmul %214, %215, %cst_140 {dimension_numbers = #tpu.dot_dimension_numbers<[1], [1], [0], [0], [0, 0, 1, 0], [], []>} : vector<8x16xf32>, vector<8x16xf32>, vector<8x8xf32> -> vector<8x8xf32>
    %cst_141 = arith.constant 2.500000e-01 : f32
    %218 = vector.broadcast %cst_141 : f32 to vector<8x8xf32>
    %219 = arith.mulf %217, %218 : vector<8x8xf32>
    %cst_142 = arith.constant dense<0xFF800000> : vector<8xf32>
    %220 = vector.multi_reduction <maximumf>, %219, %cst_142 [1] : vector<8x8xf32> to vector<8xf32>
    %221 = vector.shape_cast %220 : vector<8xf32> to vector<8x1xf32>
    %222 = vector.broadcast %221 : vector<8x1xf32> to vector<8x8xf32>
    %223 = arith.subf %219, %222 : vector<8x8xf32>
    %224 = math.exp %223 : vector<8x8xf32>
    %cst_143 = arith.constant dense<0.000000e+00> : vector<8xf32>
    %225 = vector.multi_reduction <add>, %224, %cst_143 [1] : vector<8x8xf32> to vector<8xf32>
    %226 = vector.shape_cast %225 : vector<8xf32> to vector<8x1xf32>
    %227 = tpu.reciprocal %226 {approx = true} : vector<8x1xf32> -> vector<8x1xf32>
    %228 = vector.broadcast %227 : vector<8x1xf32> to vector<8x8xf32>
    %229 = arith.mulf %224, %228 : vector<8x8xf32>
    %cst_144 = arith.constant dense<0.000000e+00> : vector<8x16xf32>
    %230 = tpu.matmul %229, %216, %cst_144 {dimension_numbers = #tpu.dot_dimension_numbers<[1], [0], [0], [1], [0, 0, 1, 1], [], []>} : vector<8x8xf32>, vector<8x16xf32>, vector<8x16xf32> -> vector<8x16xf32>
    %c0_145 = arith.constant 0 : index
    %c16_146 = arith.constant 16 : index
    %231 = vector.load %arg19[%c0_145, %c16_146] : memref<16x32xf32, #tpu.memory_space<vmem>>, vector<8x16xf32>
    tpu.vector_store %arg19[%c0_145, %c16_146], %230 {strides = array<i32>} : memref<16x32xf32, #tpu.memory_space<vmem>>, vector<8x16xf32>,
    %c8_147 = arith.constant 8 : index
    %c0_148 = arith.constant 0 : index
    %232 = vector.load %arg18[%c8_147, %c0_148] : memref<16x96xf32, #tpu.memory_space<vmem>>, vector<8x16xf32>
    %c8_149 = arith.constant 8 : index
    %c32_150 = arith.constant 32 : index
    %233 = vector.load %arg18[%c8_149, %c32_150] : memref<16x96xf32, #tpu.memory_space<vmem>>, vector<8x16xf32>
    %c8_151 = arith.constant 8 : index
    %c64_152 = arith.constant 64 : index
    %234 = vector.load %arg18[%c8_151, %c64_152] : memref<16x96xf32, #tpu.memory_space<vmem>>, vector<8x16xf32>
    %cst_153 = arith.constant dense<0.000000e+00> : vector<8x8xf32>
    %235 = tpu.matmul %232, %233, %cst_153 {dimension_numbers = #tpu.dot_dimension_numbers<[1], [1], [0], [0], [0, 0, 1, 0], [], []>} : vector<8x16xf32>, vector<8x16xf32>, vector<8x8xf32> -> vector<8x8xf32>
    %cst_154 = arith.constant 2.500000e-01 : f32
    %236 = vector.broadcast %cst_154 : f32 to vector<8x8xf32>
    %237 = arith.mulf %235, %236 : vector<8x8xf32>
    %cst_155 = arith.constant dense<0xFF800000> : vector<8xf32>
    %238 = vector.multi_reduction <maximumf>, %237, %cst_155 [1] : vector<8x8xf32> to vector<8xf32>
    %239 = vector.shape_cast %238 : vector<8xf32> to vector<8x1xf32>
    %240 = vector.broadcast %239 : vector<8x1xf32> to vector<8x8xf32>
    %241 = arith.subf %237, %240 : vector<8x8xf32>
    %242 = math.exp %241 : vector<8x8xf32>
    %cst_156 = arith.constant dense<0.000000e+00> : vector<8xf32>
    %243 = vector.multi_reduction <add>, %242, %cst_156 [1] : vector<8x8xf32> to vector<8xf32>
    %244 = vector.shape_cast %243 : vector<8xf32> to vector<8x1xf32>
    %245 = tpu.reciprocal %244 {approx = true} : vector<8x1xf32> -> vector<8x1xf32>
    %246 = vector.broadcast %245 : vector<8x1xf32> to vector<8x8xf32>
    %247 = arith.mulf %242, %246 : vector<8x8xf32>
    %cst_157 = arith.constant dense<0.000000e+00> : vector<8x16xf32>
    %248 = tpu.matmul %247, %234, %cst_157 {dimension_numbers = #tpu.dot_dimension_numbers<[1], [0], [0], [1], [0, 0, 1, 1], [], []>} : vector<8x8xf32>, vector<8x16xf32>, vector<8x16xf32> -> vector<8x16xf32>
    %c8_158 = arith.constant 8 : index
    %c0_159 = arith.constant 0 : index
    %249 = vector.load %arg19[%c8_158, %c0_159] : memref<16x32xf32, #tpu.memory_space<vmem>>, vector<8x16xf32>
    tpu.vector_store %arg19[%c8_158, %c0_159], %248 {strides = array<i32>} : memref<16x32xf32, #tpu.memory_space<vmem>>, vector<8x16xf32>,
    %c8_160 = arith.constant 8 : index
    %c16_161 = arith.constant 16 : index
    %250 = vector.load %arg18[%c8_160, %c16_161] : memref<16x96xf32, #tpu.memory_space<vmem>>, vector<8x16xf32>
    %c8_162 = arith.constant 8 : index
    %c48_163 = arith.constant 48 : index
    %251 = vector.load %arg18[%c8_162, %c48_163] : memref<16x96xf32, #tpu.memory_space<vmem>>, vector<8x16xf32>
    %c8_164 = arith.constant 8 : index
    %c80_165 = arith.constant 80 : index
    %252 = vector.load %arg18[%c8_164, %c80_165] : memref<16x96xf32, #tpu.memory_space<vmem>>, vector<8x16xf32>
    %cst_166 = arith.constant dense<0.000000e+00> : vector<8x8xf32>
    %253 = tpu.matmul %250, %251, %cst_166 {dimension_numbers = #tpu.dot_dimension_numbers<[1], [1], [0], [0], [0, 0, 1, 0], [], []>} : vector<8x16xf32>, vector<8x16xf32>, vector<8x8xf32> -> vector<8x8xf32>
    %cst_167 = arith.constant 2.500000e-01 : f32
    %254 = vector.broadcast %cst_167 : f32 to vector<8x8xf32>
    %255 = arith.mulf %253, %254 : vector<8x8xf32>
    %cst_168 = arith.constant dense<0xFF800000> : vector<8xf32>
    %256 = vector.multi_reduction <maximumf>, %255, %cst_168 [1] : vector<8x8xf32> to vector<8xf32>
    %257 = vector.shape_cast %256 : vector<8xf32> to vector<8x1xf32>
    %258 = vector.broadcast %257 : vector<8x1xf32> to vector<8x8xf32>
    %259 = arith.subf %255, %258 : vector<8x8xf32>
    %260 = math.exp %259 : vector<8x8xf32>
    %cst_169 = arith.constant dense<0.000000e+00> : vector<8xf32>
    %261 = vector.multi_reduction <add>, %260, %cst_169 [1] : vector<8x8xf32> to vector<8xf32>
    %262 = vector.shape_cast %261 : vector<8xf32> to vector<8x1xf32>
    %263 = tpu.reciprocal %262 {approx = true} : vector<8x1xf32> -> vector<8x1xf32>
    %264 = vector.broadcast %263 : vector<8x1xf32> to vector<8x8xf32>
    %265 = arith.mulf %260, %264 : vector<8x8xf32>
    %cst_170 = arith.constant dense<0.000000e+00> : vector<8x16xf32>
    %266 = tpu.matmul %265, %252, %cst_170 {dimension_numbers = #tpu.dot_dimension_numbers<[1], [0], [0], [1], [0, 0, 1, 1], [], []>} : vector<8x8xf32>, vector<8x16xf32>, vector<8x16xf32> -> vector<8x16xf32>
    %c8_171 = arith.constant 8 : index
    %c16_172 = arith.constant 16 : index
    %267 = vector.load %arg19[%c8_171, %c16_172] : memref<16x32xf32, #tpu.memory_space<vmem>>, vector<8x16xf32>
    tpu.vector_store %arg19[%c8_171, %c16_172], %266 {strides = array<i32>} : memref<16x32xf32, #tpu.memory_space<vmem>>, vector<8x16xf32>,
    %c0_173 = arith.constant 0 : index
    %c0_174 = arith.constant 0 : index
    %268 = vector.load %arg19[%c0_173, %c0_174] : memref<16x32xf32, #tpu.memory_space<vmem>>, vector<16x32xf32>
    %c1_175 = arith.constant 1 : index
    %c0_176 = arith.constant 0 : index
    %c0_177 = arith.constant 0 : index
    %269 = vector.load %arg5[%c1_175, %c0_176, %c0_177] : memref<2x32x32xf32, #tpu.memory_space<vmem>>, vector<1x32x32xf32>
    %270 = vector.shape_cast %269 : vector<1x32x32xf32> to vector<32x32xf32>
    %cst_178 = arith.constant dense<0.000000e+00> : vector<16x32xf32>
    %271 = tpu.matmul %268, %270, %cst_178 {dimension_numbers = #tpu.dot_dimension_numbers<[1], [0], [0], [1], [0, 0, 1, 1], [], []>} : vector<16x32xf32>, vector<32x32xf32>, vector<16x32xf32> -> vector<16x32xf32>
    %c1_179 = arith.constant 1 : index
    %c0_180 = arith.constant 0 : index
    %c0_181 = arith.constant 0 : index
    %272 = vector.load %arg6[%c1_179, %c0_180, %c0_181] : memref<2x1x32xf32, #tpu.memory_space<vmem>>, vector<1x1x32xf32>
    %273 = vector.shape_cast %272 : vector<1x1x32xf32> to vector<1x32xf32>
    %274 = vector.broadcast %273 : vector<1x32xf32> to vector<16x32xf32>
    %275 = arith.addf %271, %274 : vector<16x32xf32>
    %276 = arith.addf %187, %275 : vector<16x32xf32>
    %c1_182 = arith.constant 1 : index
    %c0_183 = arith.constant 0 : index
    %c0_184 = arith.constant 0 : index
    %277 = vector.load %arg7[%c1_182, %c0_183, %c0_184] : memref<2x1x32xf32, #tpu.memory_space<vmem>>, vector<1x1x32xf32>
    %278 = vector.shape_cast %277 : vector<1x1x32xf32> to vector<1x32xf32>
    %c1_185 = arith.constant 1 : index
    %c0_186 = arith.constant 0 : index
    %c0_187 = arith.constant 0 : index
    %279 = vector.load %arg8[%c1_185, %c0_186, %c0_187] : memref<2x1x32xf32, #tpu.memory_space<vmem>>, vector<1x1x32xf32>
    %280 = vector.shape_cast %279 : vector<1x1x32xf32> to vector<1x32xf32>
    %cst_188 = arith.constant dense<0.000000e+00> : vector<16xf32>
    %281 = vector.multi_reduction <add>, %276, %cst_188 [1] : vector<16x32xf32> to vector<16xf32>
    %282 = vector.shape_cast %281 : vector<16xf32> to vector<16x1xf32>
    %cst_189 = arith.constant 3.200000e+01 : f32
    %283 = vector.broadcast %cst_189 : f32 to vector<16x1xf32>
    %284 = arith.divf %282, %283 : vector<16x1xf32>
    %285 = vector.broadcast %284 : vector<16x1xf32> to vector<16x32xf32>
    %286 = arith.subf %276, %285 : vector<16x32xf32>
    %287 = arith.mulf %286, %286 : vector<16x32xf32>
    %cst_190 = arith.constant dense<0.000000e+00> : vector<16xf32>
    %288 = vector.multi_reduction <add>, %287, %cst_190 [1] : vector<16x32xf32> to vector<16xf32>
    %289 = vector.shape_cast %288 : vector<16xf32> to vector<16x1xf32>
    %cst_191 = arith.constant 3.200000e+01 : f32
    %290 = vector.broadcast %cst_191 : f32 to vector<16x1xf32>
    %291 = arith.divf %289, %290 : vector<16x1xf32>
    %cst_192 = arith.constant 9.99999974E-6 : f32
    %292 = vector.broadcast %cst_192 : f32 to vector<16x1xf32>
    %293 = arith.addf %291, %292 : vector<16x1xf32>
    %294 = math.rsqrt %293 : vector<16x1xf32>
    %295 = vector.broadcast %294 : vector<16x1xf32> to vector<16x32xf32>
    %296 = arith.mulf %286, %295 : vector<16x32xf32>
    %297 = vector.broadcast %278 : vector<1x32xf32> to vector<16x32xf32>
    %298 = arith.mulf %296, %297 : vector<16x32xf32>
    %299 = vector.broadcast %280 : vector<1x32xf32> to vector<16x32xf32>
    %300 = arith.addf %298, %299 : vector<16x32xf32>
    %c1_193 = arith.constant 1 : index
    %c0_194 = arith.constant 0 : index
    %c0_195 = arith.constant 0 : index
    %301 = vector.load %arg9[%c1_193, %c0_194, %c0_195] : memref<2x32x64xf32, #tpu.memory_space<vmem>>, vector<1x32x64xf32>
    %302 = vector.shape_cast %301 : vector<1x32x64xf32> to vector<32x64xf32>
    %cst_196 = arith.constant dense<0.000000e+00> : vector<16x64xf32>
    %303 = tpu.matmul %300, %302, %cst_196 {dimension_numbers = #tpu.dot_dimension_numbers<[1], [0], [0], [1], [0, 0, 1, 1], [], []>} : vector<16x32xf32>, vector<32x64xf32>, vector<16x64xf32> -> vector<16x64xf32>
    %c1_197 = arith.constant 1 : index
    %c0_198 = arith.constant 0 : index
    %c0_199 = arith.constant 0 : index
    %304 = vector.load %arg10[%c1_197, %c0_198, %c0_199] : memref<2x1x64xf32, #tpu.memory_space<vmem>>, vector<1x1x64xf32>
    %305 = vector.shape_cast %304 : vector<1x1x64xf32> to vector<1x64xf32>
    %306 = vector.broadcast %305 : vector<1x64xf32> to vector<16x64xf32>
    %307 = arith.addf %303, %306 : vector<16x64xf32>
    %308 = arith.mulf %307, %307 : vector<16x64xf32>
    %309 = arith.mulf %307, %308 : vector<16x64xf32>
    %cst_200 = arith.constant 4.471500e-02 : f32
    %310 = vector.broadcast %cst_200 : f32 to vector<16x64xf32>
    %311 = arith.mulf %310, %309 : vector<16x64xf32>
    %312 = arith.addf %307, %311 : vector<16x64xf32>
    %cst_201 = arith.constant 0.797884583 : f32
    %313 = vector.broadcast %cst_201 : f32 to vector<16x64xf32>
    %314 = arith.mulf %313, %312 : vector<16x64xf32>
    %315 = math.tanh %314 : vector<16x64xf32>
    %cst_202 = arith.constant 1.000000e+00 : f32
    %316 = vector.broadcast %cst_202 : f32 to vector<16x64xf32>
    %317 = arith.addf %316, %315 : vector<16x64xf32>
    %cst_203 = arith.constant 5.000000e-01 : f32
    %318 = vector.broadcast %cst_203 : f32 to vector<16x64xf32>
    %319 = arith.mulf %318, %317 : vector<16x64xf32>
    %320 = arith.mulf %307, %319 : vector<16x64xf32>
    %c1_204 = arith.constant 1 : index
    %c0_205 = arith.constant 0 : index
    %c0_206 = arith.constant 0 : index
    %321 = vector.load %arg11[%c1_204, %c0_205, %c0_206] : memref<2x64x32xf32, #tpu.memory_space<vmem>>, vector<1x64x32xf32>
    %322 = vector.shape_cast %321 : vector<1x64x32xf32> to vector<64x32xf32>
    %cst_207 = arith.constant dense<0.000000e+00> : vector<16x32xf32>
    %323 = tpu.matmul %320, %322, %cst_207 {dimension_numbers = #tpu.dot_dimension_numbers<[1], [0], [0], [1], [0, 0, 1, 1], [], []>} : vector<16x64xf32>, vector<64x32xf32>, vector<16x32xf32> -> vector<16x32xf32>
    %c1_208 = arith.constant 1 : index
    %c0_209 = arith.constant 0 : index
    %c0_210 = arith.constant 0 : index
    %324 = vector.load %arg12[%c1_208, %c0_209, %c0_210] : memref<2x1x32xf32, #tpu.memory_space<vmem>>, vector<1x1x32xf32>
    %325 = vector.shape_cast %324 : vector<1x1x32xf32> to vector<1x32xf32>
    %326 = vector.broadcast %325 : vector<1x32xf32> to vector<16x32xf32>
    %327 = arith.addf %323, %326 : vector<16x32xf32>
    %328 = arith.addf %300, %327 : vector<16x32xf32>
    %c1_211 = arith.constant 1 : index
    %c0_212 = arith.constant 0 : index
    %c0_213 = arith.constant 0 : index
    %329 = vector.load %arg13[%c1_211, %c0_212, %c0_213] : memref<2x1x32xf32, #tpu.memory_space<vmem>>, vector<1x1x32xf32>
    %330 = vector.shape_cast %329 : vector<1x1x32xf32> to vector<1x32xf32>
    %c1_214 = arith.constant 1 : index
    %c0_215 = arith.constant 0 : index
    %c0_216 = arith.constant 0 : index
    %331 = vector.load %arg14[%c1_214, %c0_215, %c0_216] : memref<2x1x32xf32, #tpu.memory_space<vmem>>, vector<1x1x32xf32>
    %332 = vector.shape_cast %331 : vector<1x1x32xf32> to vector<1x32xf32>
    %cst_217 = arith.constant dense<0.000000e+00> : vector<16xf32>
    %333 = vector.multi_reduction <add>, %328, %cst_217 [1] : vector<16x32xf32> to vector<16xf32>
    %334 = vector.shape_cast %333 : vector<16xf32> to vector<16x1xf32>
    %cst_218 = arith.constant 3.200000e+01 : f32
    %335 = vector.broadcast %cst_218 : f32 to vector<16x1xf32>
    %336 = arith.divf %334, %335 : vector<16x1xf32>
    %337 = vector.broadcast %336 : vector<16x1xf32> to vector<16x32xf32>
    %338 = arith.subf %328, %337 : vector<16x32xf32>
    %339 = arith.mulf %338, %338 : vector<16x32xf32>
    %cst_219 = arith.constant dense<0.000000e+00> : vector<16xf32>
    %340 = vector.multi_reduction <add>, %339, %cst_219 [1] : vector<16x32xf32> to vector<16xf32>
    %341 = vector.shape_cast %340 : vector<16xf32> to vector<16x1xf32>
    %cst_220 = arith.constant 3.200000e+01 : f32
    %342 = vector.broadcast %cst_220 : f32 to vector<16x1xf32>
    %343 = arith.divf %341, %342 : vector<16x1xf32>
    %cst_221 = arith.constant 9.99999974E-6 : f32
    %344 = vector.broadcast %cst_221 : f32 to vector<16x1xf32>
    %345 = arith.addf %343, %344 : vector<16x1xf32>
    %346 = math.rsqrt %345 : vector<16x1xf32>
    %347 = vector.broadcast %346 : vector<16x1xf32> to vector<16x32xf32>
    %348 = arith.mulf %338, %347 : vector<16x32xf32>
    %349 = vector.broadcast %330 : vector<1x32xf32> to vector<16x32xf32>
    %350 = arith.mulf %348, %349 : vector<16x32xf32>
    %351 = vector.broadcast %332 : vector<1x32xf32> to vector<16x32xf32>
    %352 = arith.addf %350, %351 : vector<16x32xf32>
    %c0_222 = arith.constant 0 : index
    %c0_223 = arith.constant 0 : index
    %353 = vector.load %arg15[%c0_222, %c0_223] : memref<32x2xf32, #tpu.memory_space<vmem>>, vector<32x2xf32>
    %cst_224 = arith.constant dense<0.000000e+00> : vector<16x2xf32>
    %354 = tpu.matmul %352, %353, %cst_224 {dimension_numbers = #tpu.dot_dimension_numbers<[1], [0], [0], [1], [0, 0, 1, 1], [], []>} : vector<16x32xf32>, vector<32x2xf32>, vector<16x2xf32> -> vector<16x2xf32>
    %c0_225 = arith.constant 0 : index
    %c0_226 = arith.constant 0 : index
    %355 = vector.load %arg16[%c0_225, %c0_226] : memref<1x2xf32, #tpu.memory_space<vmem>>, vector<1x2xf32>
    %356 = vector.broadcast %355 : vector<1x2xf32> to vector<16x2xf32>
    %357 = arith.addf %354, %356 : vector<16x2xf32>
    %c0_227 = arith.constant 0 : index
    %c0_228 = arith.constant 0 : index
    %358 = vector.load %arg20[%c0_227, %c0_228] : memref<16x2xf32, #tpu.memory_space<vmem>>, vector<16x2xf32>
    tpu.vector_store %arg20[%c0_227, %c0_228], %357 {strides = array<i32>} : memref<16x2xf32, #tpu.memory_space<vmem>>, vector<16x2xf32>,
    %c0_229 = arith.constant 0 : index
    %c0_230 = arith.constant 0 : index
    %359 = vector.load %arg20[%c0_229, %c0_230] : memref<16x2xf32, #tpu.memory_space<vmem>>, vector<1x2xf32>
    %c0_231 = arith.constant 0 : index
    %c0_232 = arith.constant 0 : index
    %360 = vector.load %arg17[%c0_231, %c0_232] : memref<2x2xf32, #tpu.memory_space<vmem>>, vector<1x2xf32>
    tpu.vector_store %arg17[%c0_231, %c0_232], %359 {strides = array<i32>} : memref<2x2xf32, #tpu.memory_space<vmem>>, vector<1x2xf32>,
    %c8_233 = arith.constant 8 : index
    %c0_234 = arith.constant 0 : index
    %361 = vector.load %arg20[%c8_233, %c0_234] : memref<16x2xf32, #tpu.memory_space<vmem>>, vector<1x2xf32>
    %c1_235 = arith.constant 1 : index
    %c0_236 = arith.constant 0 : index
    %362 = vector.load %arg17[%c1_235, %c0_236] : memref<2x2xf32, #tpu.memory_space<vmem>>, vector<1x2xf32>
    tpu.vector_store %arg17[%c1_235, %c0_236], %361 {strides = array<i32>} : memref<2x2xf32, #tpu.memory_space<vmem>>, vector<1x2xf32>,
    return
  }
}

</mosaic_0001>

<bundles_post_ra>
// kernel: ditto_forward.1
= control target key start
LH: loop header
LB: loop body
LE: loop exit
PB: predicated region body
PF: predicated region fallthrough
CT: control target
= control target key end

     0   :  { %s3552_s0 = inlined_call_operand.vmem [shape: f32[16,32], index: 0, kind: input, shape index: {}]   ;;  %s3553_s1 = inlined_call_operand.vmem [shape: f32[1,32], index: 1, kind: input, shape index: {}]   ;;  %s3554_s2 = inlined_call_operand.vmem [shape: f32[1,32], index: 2, kind: input, shape index: {}]   ;;  %s3555_s3 = inlined_call_operand.vmem [shape: f32[2,32,96], index: 3, kind: input, shape index: {}]   ;;  %s3556_s4 = inlined_call_operand.vmem [shape: f32[2,1,96], index: 4, kind: input, shape index: {}]   ;;  %s3557_s5 = inlined_call_operand.vmem [shape: f32[2,32,32], index: 5, kind: input, shape index: {}]   ;;  %s3558_s6 = inlined_call_operand.vmem [shape: f32[2,1,32], index: 6, kind: input, shape index: {}]   ;;  %s3559_s7 = inlined_call_operand.vmem [shape: f32[2,1,32], index: 7, kind: input, shape index: {}]   ;;  %s3560_s8 = inlined_call_operand.vmem [shape: f32[2,1,32], index: 8, kind: input, shape index: {}]   ;;  %s3561_s9 = inlined_call_operand.vmem [shape: f32[2,32,64], index: 9, kind: input, shape index: {}]   ;;  %s3562_s10 = inlined_call_operand.vmem [shape: f32[2,1,64], index: 10, kind: input, shape index: {}]   ;;  %s3563_s11 = inlined_call_operand.vmem [shape: f32[2,64,32], index: 11, kind: input, shape index: {}]   ;;  %s3564_s12 = inlined_call_operand.vmem [shape: f32[2,1,32], index: 12, kind: input, shape index: {}]   ;;  %s3565_s13 = inlined_call_operand.vmem [shape: f32[2,1,32], index: 13, kind: input, shape index: {}]   ;;  %s3566_s14 = inlined_call_operand.vmem [shape: f32[2,1,32], index: 14, kind: input, shape index: {}]   ;;  %s3567_s15 = inlined_call_operand.vmem [shape: f32[32,2], index: 15, kind: input, shape index: {}]   ;;  %s3568_s16 = inlined_call_operand.vmem [shape: f32[1,2], index: 16, kind: input, shape index: {}]   ;;  %s3569_s17 = inlined_call_operand.hbm [shape: f32[2,2], index: 17, kind: output, shape index: {}]  }
   0x1   :  { %3571 = sst [smem:[#allocation8_spill]] %s3552_s0 }
   0x2   :  { %3572 = sst [smem:[#allocation9_spill]] %s3553_s1 }
   0x3   :  { %s3573_s26 = sld [smem:[#allocation8_spill]]  ;;  %vm61_vm0 = vcmask 261120  }
   0x9   :  { %v57_v0 = vld [vmem:[%s3573_s26] sm:$0xff]  ;;  %v58_v1 = vld [vmem:[%s3573_s26 + $0x8] sm:$0xff] }
   0xa   :  { %22 = vsyncpa [#allocation6], 0  ;;  %v62_v2 = vsel %vm61_vm0, %v57_v0, 0.0  ;;  %v65_v3 = vsel %vm61_vm0, %v58_v1, 0.0  ;;  %v108_v14 = vld [vmem:[%s3555_s3 + $0x18] sm:$0xff]  ;;  %v107_v15 = vld [vmem:[%s3555_s3 + $0x10] sm:$0xff] }
   0xb   :  { %63 = vadd.xlane.f32.xlu0 %v62_v2  ;;  %2751 = vmatprep.subr.mxu0 %v108_v14  ;;  %v106_v16 = vld [vmem:[%s3555_s3 + $0x8] sm:$0xff]  ;;  %v105_v17 = vld [vmem:[%s3555_s3] sm:$0xff]  ;;  %s3574_s24 = sld [smem:[#allocation9_spill]]  ;;  %v3037_v34 = vmov 0.0   ;;  %vm197_vm1 = vcmask 785408   ;;  %vm3038_vm2 = vmmov 0  }
   0xc   :  { %2752 = vmatpush3.msra.mxu0 %v108_v14  ;;  %v2569_v27 = vld [vmem:[%s3554_s2] ss:$0 sm:$0xff]  ;;  %2762 = vmatprep.subr.mxu1 %v3037_v34  ;;  %s3039_s28 = smov 96   ;;  %s3040_s29 = smov 80   ;;  %vm204_vm3 = vcmask 130048   ;;  %vm280_vm4 = vcmask 64512  }
   0xd   :  { %2753 = vmatprep.subr.mxu0 %v107_v15  ;;  %v2570_v35 = vld [vmem:[%s3556_s4] ss:$0 sm:$0xff]  ;;  %2764 = vmatprep.mubr.msk.f32.mxu1 %vm3038_vm2, %v3037_v34  ;;  %s3041_s0 = smov 112   ;;  %s3042_s30 = smov 64   ;;  %vm541_vm5 = vcmask 261248   ;;  %vm1148_vm6 = vcmask 523264  }
   0xe   :  { %2754 = vmatpush3.msra.mxu0 %v107_v15  ;;  %s3043_s18 = smov 48   ;;  %s3044_s26 = smov 16   ;;  %vm2546_vm7 = vcmask 15360   ;;  %vm2550_vm8 = vcmask 8192  }
   0xf   :  { %66 = vadd.xlane.f32.xlu0 %v65_v3  ;;  %2755 = vmatprep.subr.mxu0 %v106_v16 }
  0x10   :  { %2756 = vmatpush3.msra.mxu0 %v106_v16 }
  0x11   :  { %2757 = vmatprep.subr.mxu0 %v105_v17  ;;  %v2568_v25 = vld [vmem:[%s3574_s24] ss:$0 sm:$0xff] }
  0x12   :  { %2758 = vmatpush3.msra.mxu0 %v105_v17 }
  0x13   :  { %2782 = vmatprep.subr.mxu0 %v3037_v34 }
  0x94   :  { %v64_v4 = vpop.xlane.xlu0 %63 }
  0x95   :  { %v69_v5 = vmul.f32 0.03125, %v64_v4 }
  0x97   :  { %v71_v6 = vsub.f32 %v57_v0, %v69_v5 }
  0x98   :  { %v67_v7 = vpop.xlane.xlu0 %66 }
  0x99   :  { %v70_v8 = vmul.f32 0.03125, %v67_v7  ;;  %v73_v9 = vmul.f32 %v71_v6, %v71_v6 }
  0x9b   :  { %v72_v10 = vsub.f32 %v58_v1, %v70_v8  ;;  %v75_v11 = vsel %vm61_vm0, %v73_v9, 0.0 }
  0x9c   :  { %76 = vadd.xlane.f32.xlu1 %v75_v11 }
  0x9d   :  { %v74_v12 = vmul.f32 %v72_v10, %v72_v10 }
  0x9f   :  { %v78_v13 = vsel %vm61_vm0, %v74_v12, 0.0 }
  0xa0   :  { %79 = vadd.xlane.f32.xlu1 %v78_v13 }
 0x125   :  { %v77_v18 = vpop.xlane.xlu1 %76 }
 0x126   :  { %v81_v19 = vmul.f32 0.03125, %v77_v18 }
 0x128   :  { %v83_v20 = vadd.f32 1e-05, %v81_v19 }
 0x129   :  { %v80_v21 = vpop.xlane.xlu1 %79 }
 0x12a   :  { %2955 = vrsqrt.f32 %v83_v20  ;;  %v82_v22 = vmul.f32 0.03125, %v80_v21 }
 0x12c   :  { %v84_v23 = vadd.f32 1e-05, %v82_v22 }
 0x12e   :  { %2957 = vrsqrt.f32 %v84_v23 }
 0x137   :  { %v2956_v24 = vpop.eup %2955 }
 0x138   :  { %v87_v26 = vmul.f32 %v2956_v24, %v71_v6 }
 0x13a   :  { %v95_v28 = vmul.f32 %v2568_v25, %v87_v26 }
 0x13b   :  { %v2958_v29 = vpop.eup %2957 }
 0x13c   :  { %v88_v30 = vmul.f32 %v2958_v29, %v72_v10  ;;  %v3164_v31 = vadd.f32 %v2569_v27, %v95_v28 }
 0x13e   :  { %v96_v32 = vmul.f32 %v2568_v25, %v88_v30  ;;  %2759 = vmatprep.mubr.msk.f32.mxu0 %vm61_vm0, %v3164_v31 }
 0x140   :  { %v3168_v33 = vadd.f32 %v2569_v27, %v96_v32 }
 0x142   :  { %2760 = vmatmul.mubr.msk.f32.vlgmr.msra.gmra.mxu0 %vm61_vm0, %v3168_v33 }
 0x143   :  { %2784 = vmatprep.mubr.msk.f32.mxu0 %vm3038_vm2, %v3037_v34 }
 0x202   :  { %v2761_v36 = vpop.f32.mrf.mxu0 }
 0x203   :  { %v194_v37 = vadd.f32 %v2761_v36, %v2570_v35 }
 0x204   :  { %v188_v38 = vpop.f32.mrf.mxu0 }
 0x205   :  { %199 = vst.msk [vmem:[#allocation2 + $0x8] sm:$0xff] %vm197_vm1, %v194_v37  ;;  %v189_v39 = vadd.f32 %v2570_v35, %v188_v38 }
 0x207   :  { %198 = vst.msk [vmem:[#allocation2] sm:$0xff] %vm197_vm1, %v189_v39 }
 0x20c   :  { %v3189_v41 = vld [vmem:[#allocation2 + $0x8] sm:$0xff] }
 0x20e   :  { %v3183_v40 = vld [vmem:[#allocation2] sm:$0xff] }
 0x20f   :  { %202 = vrot.lane.b32.xlu0 %v3183_v40, %s3039_s28 }
 0x213   :  { %373 = vrot.lane.b32.xlu0 %v3183_v40, %s3040_s29 }
 0x217   :  { %545 = vrot.lane.b32.xlu0 %v3189_v41, %s3039_s28 }
 0x21b   :  { %712 = vrot.lane.b32.xlu0 %v3189_v41, %s3041_s0 }
 0x281   :  { %v203_v42 = vpop.permute.xlu0 %202 }
 0x282   :  { %2763 = vmatpush3.xpose.msk.msra.mxu1 %vm204_vm3, %v203_v42  ;;  %v887_v42 = vld [vmem:[%s3557_s5 + $0x10] sm:$0xff] }
 0x283   :  { %2767 = vmatprep.subr.mxu1 %v3037_v34 }
 0x285   :  { %2765 = vmatmul.mubr.msk.f32.vlgmr.msra.gmra.mxu1 %vm204_vm3, %v3183_v40  ;;  %v374_v43 = vpop.permute.xlu0 %373 }
 0x286   :  { %2769 = vmatprep.mubr.msk.f32.mxu1 %vm3038_vm2, %v3037_v34 }
 0x289   :  { %v546_v44 = vpop.permute.xlu0 %545 }
 0x28a   :  { %2783 = vmatpush3.xpose.msk.msra.mxu0 %vm204_vm3, %v546_v44 }
 0x28b   :  { %2792 = vmatprep.subr.mxu0 %v3037_v34 }
 0x28d   :  { %2785 = vmatmul.mubr.msk.f32.vlgmr.msra.gmra.mxu0 %vm204_vm3, %v3189_v41  ;;  %v713_v62 = vpop.permute.xlu0 %712 }
 0x28e   :  { %2794 = vmatprep.mubr.msk.f32.mxu0 %vm3038_vm2, %v3037_v34 }
 0x345   :  { %v275_v45 = vpop.f32.mrf.mxu1 }
 0x346   :  { %v279_v46 = vmul.f32 0.25, %v275_v45  ;;  %v885_v45 = vld [vmem:[%s3557_s5] sm:$0xff] }
 0x347   :  { %v2766_v47 = vpop.f32.mrf.mxu1 }
 0x348   :  { %v281_v48 = vsel %vm280_vm4, %v279_v46, -inf }
 0x349   :  { %282 = vmax.xlane.f32.xlu1 %v281_v48 }
 0x34d   :  { %v617_v49 = vpop.f32.mrf.mxu0 }
 0x34e   :  { %v621_v50 = vmul.f32 0.25, %v617_v49 }
 0x34f   :  { %v2786_v51 = vpop.f32.mrf.mxu0 }
 0x350   :  { %v622_v52 = vsel %vm280_vm4, %v621_v50, -inf }
 0x351   :  { %623 = vmax.xlane.f32.xlu0 %v622_v52 }
 0x35a   :  { %292 = vrot.lane.b32.xlu1 %v3183_v40, %s3042_s30 }
 0x3d2   :  { %v283_v53 = vpop.xlane.xlu1 %282 }
 0x3d3   :  { %v284_v54 = vsub.f32 %v279_v46, %v283_v53 }
 0x3d5   :  { %v285_v55 = vmul.f32 1.442695, %v284_v54 }
 0x3d6   :  { %v293_v56 = vpop.permute.xlu1 %292 }
 0x3d7   :  { %2959 = vpow2.f32 %v285_v55  ;;  %2768 = vmatpush3.msra.mxu1 %v293_v56  ;;  %v2585_v55 = vld [vmem:[%s3558_s6] ss:$0 sm:$0xff] }
 0x3d8   :  { %2772 = vmatprep.subr.mxu1 %v3037_v34 }
 0x3da   :  { %v624_v1 = vpop.xlane.xlu0 %623 }
 0x3db   :  { %v625_v2 = vsub.f32 %v621_v50, %v624_v1 }
 0x3dd   :  { %v626_v3 = vmul.f32 1.442695, %v625_v2 }
 0x3e4   :  { %v2960_v57 = vpop.eup %2959 }
 0x3e5   :  { %v287_v58 = vsel %vm280_vm4, %v2960_v57, 0.0 }
 0x3e6   :  { %288 = vadd.xlane.f32.xlu1 %v287_v58 }
 0x3f7   :  { %371 = vrot.lane.b32.xlu1 %v3183_v40, %s3041_s0 }
 0x3fb   :  { %714 = vrot.lane.b32.xlu1 %v3189_v41, %s3040_s29 }
 0x46f   :  { %v289_v59 = vpop.xlane.xlu1 %288 }
 0x470   :  { %2961 = vrcp.f32 %v289_v59 }
 0x471   :  { %2963 = vpow2.f32 %v626_v3 }
 0x473   :  { %v372_v60 = vpop.permute.xlu1 %371 }
 0x477   :  { %v715_v61 = vpop.permute.xlu1 %714 }
 0x478   :  { %2793 = vmatpush3.xpose.msk.msra.mxu0 %vm204_vm3, %v715_v61 }
 0x47b   :  { %2795 = vmatmul.mubr.msk.f32.vlgmr.msra.gmra.mxu0 %vm204_vm3, %v713_v62 }
 0x47d   :  { %v2962_v63 = vpop.eup %2961 }
 0x47e   :  { %v291_v0 = vmul.f32 %v2962_v63, %v2960_v57  ;;  %v2964_v14 = vpop.eup %2963 }
 0x47f   :  { %v628_v15 = vsel %vm280_vm4, %v2964_v14, 0.0 }
 0x480   :  { %2770 = vmatmul.mubr.msk.f32.vlgmr.msra.gmra.mxu1 %vm280_vm4, %v291_v0 }
 0x481   :  { %2773 = vmatpush3.xpose.msk.msra.mxu1 %vm204_vm3, %v374_v43  ;;  %2774 = vmatprep.mubr.msk.f32.mxu1 %vm3038_vm2, %v3037_v34  ;;  %v886_v43 = vld [vmem:[%s3557_s5 + $0x8] sm:$0xff] }
 0x482   :  { %2777 = vmatprep.subr.mxu1 %v3037_v34 }
 0x484   :  { %2775 = vmatmul.mubr.msk.f32.vlgmr.msra.gmra.mxu1 %vm204_vm3, %v372_v60 }
 0x485   :  { %2779 = vmatprep.mubr.msk.f32.mxu1 %vm3038_vm2, %v3037_v34 }
 0x53b   :  { %v786_v4 = vpop.f32.mrf.mxu0 }
 0x53c   :  { %v790_v5 = vmul.f32 0.25, %v786_v4 }
 0x53d   :  { %v2796_v6 = vpop.f32.mrf.mxu0 }
 0x53e   :  { %v791_v7 = vsel %vm280_vm4, %v790_v5, -inf }
 0x53f   :  { %792 = vmax.xlane.f32.xlu0 %v791_v7 }
 0x540   :  { %v364_v8 = vpop.f32.mrf.mxu1 }
 0x541   :  { %368 = vst.msk [vmem:[#allocation3] sm:$0xff] %vm204_vm3, %v364_v8 }
 0x542   :  { %v2771_v9 = vpop.f32.mrf.mxu1 }
 0x543   :  { %v1025_v9 = vld [vmem:[%s3561_s9 + $0x10] sm:$0xff] }
 0x544   :  { %v445_v10 = vpop.f32.mrf.mxu1 }
 0x545   :  { %v449_v11 = vmul.f32 0.25, %v445_v10  ;;  %v1024_v10 = vld [vmem:[%s3561_s9 + $0x8] sm:$0xff] }
 0x546   :  { %v2776_v12 = vpop.f32.mrf.mxu1 }
 0x547   :  { %v450_v13 = vsel %vm280_vm4, %v449_v11, -inf }
 0x548   :  { %451 = vmax.xlane.f32.xlu1 %v450_v13 }
 0x54c   :  { %629 = vadd.xlane.f32.xlu1 %v628_v15 }
 0x55d   :  { %461 = vrot.lane.b32.xlu1 %v3183_v40, %s3043_s18 }
 0x561   :  { %802 = vrot.lane.b32.xlu1 %v3189_v41, %s3043_s18 }
 0x5c8   :  { %v793_v16 = vpop.xlane.xlu0 %792 }
 0x5c9   :  { %v794_v17 = vsub.f32 %v790_v5, %v793_v16 }
 0x5cb   :  { %v795_v18 = vmul.f32 1.442695, %v794_v17 }
 0x5cd   :  { %2965 = vpow2.f32 %v795_v18 }
 0x5d1   :  { %v452_v19 = vpop.xlane.xlu1 %451 }
 0x5d2   :  { %v453_v20 = vsub.f32 %v449_v11, %v452_v19  ;;  %v1023_v11 = vld [vmem:[%s3561_s9] sm:$0xff] }
 0x5d3   :  { %v2588_v19 = vld [vmem:[%s3559_s7] ss:$0 sm:$0xff] }
 0x5d4   :  { %v454_v21 = vmul.f32 1.442695, %v453_v20 }
 0x5d5   :  { %v630_v22 = vpop.xlane.xlu1 %629 }
 0x5d6   :  { %2967 = vpow2.f32 %v454_v21  ;;  %v2589_v21 = vld [vmem:[%s3560_s8] ss:$0 sm:$0xff] }
 0x5d9   :  { %v462_v23 = vpop.permute.xlu1 %461 }
 0x5da   :  { %v2966_v24 = vpop.eup %2965  ;;  %2778 = vmatpush3.msra.mxu1 %v462_v23 }
 0x5db   :  { %v797_v25 = vsel %vm280_vm4, %v2966_v24, 0.0  ;;  %2787 = vmatprep.subr.mxu1 %v3037_v34 }
 0x5dc   :  { %798 = vadd.xlane.f32.xlu0 %v797_v25 }
 0x5dd   :  { %v803_v39 = vpop.permute.xlu1 %802 }
 0x5e3   :  { %v2968_v26 = vpop.eup %2967 }
 0x5e4   :  { %v456_v27 = vsel %vm280_vm4, %v2968_v26, 0.0 }
 0x5e5   :  { %457 = vadd.xlane.f32.xlu0 %v456_v27 }
 0x5fb   :  { %633 = vrot.lane.b32.xlu0 %v3189_v41, %s3042_s30  ;;  %v888_v41 = vld [vmem:[%s3557_s5 + $0x18] sm:$0xff] }
 0x5fc   :  { %2802 = vmatprep.subr.mxu0 %v888_v41 }
 0x5fd   :  { %2803 = vmatpush3.msra.mxu0 %v888_v41 }
 0x5fe   :  { %2804 = vmatprep.subr.mxu0 %v887_v42 }
 0x5ff   :  { %2805 = vmatpush3.msra.mxu0 %v887_v42 }
 0x600   :  { %2806 = vmatprep.subr.mxu0 %v886_v43 }
 0x601   :  { %2807 = vmatpush3.msra.mxu0 %v886_v43 }
 0x602   :  { %2808 = vmatprep.subr.mxu0 %v885_v45 }
 0x603   :  { %2809 = vmatpush3.msra.mxu0 %v885_v45 }
 0x665   :  { %v799_v28 = vpop.xlane.xlu0 %798 }
 0x66e   :  { %v458_v29 = vpop.xlane.xlu0 %457 }
 0x66f   :  { %2969 = vrcp.f32 %v458_v29  ;;  %v1139_v29 = vld [vmem:[%s3563_s11 + $0x30] sm:$0xff] }
 0x670   :  { %2971 = vrcp.f32 %v630_v22 }
 0x671   :  { %2973 = vrcp.f32 %v799_v28  ;;  %v1140_v28 = vld [vmem:[%s3563_s11 + $0x38] sm:$0xff] }
 0x672   :  { %v634_v36 = vpop.permute.xlu0 %633  ;;  %2824 = vmatprep.subr.mxu0 %v1140_v28 }
 0x67c   :  { %v2970_v30 = vpop.eup %2969 }
 0x67d   :  { %v460_v32 = vmul.f32 %v2970_v30, %v2968_v26  ;;  %v2972_v35 = vpop.eup %2971  ;;  %v1138_v30 = vld [vmem:[%s3563_s11 + $0x28] sm:$0xff] }
 0x67e   :  { %v632_v37 = vmul.f32 %v2972_v35, %v2964_v14  ;;  %v2974_v38 = vpop.eup %2973  ;;  %v1136_v35 = vld [vmem:[%s3563_s11 + $0x18] sm:$0xff] }
 0x67f   :  { %2780 = vmatmul.mubr.msk.f32.vlgmr.msra.gmra.mxu1 %vm280_vm4, %v460_v32  ;;  %v801_v40 = vmul.f32 %v2974_v38, %v2966_v24  ;;  %v1137_v32 = vld [vmem:[%s3563_s11 + $0x20] sm:$0xff] }
 0x680   :  { %2788 = vmatpush3.msra.mxu1 %v634_v36  ;;  %2789 = vmatprep.mubr.msk.f32.mxu1 %vm3038_vm2, %v3037_v34  ;;  %v1135_v36 = vld [vmem:[%s3563_s11 + $0x10] sm:$0xff]  ;;  %v1133_v38 = vld [vmem:[%s3563_s11] sm:$0xff] }
 0x681   :  { %2797 = vmatprep.subr.mxu1 %v3037_v34 }
 0x683   :  { %2790 = vmatmul.mubr.msk.f32.vlgmr.msra.gmra.mxu1 %vm280_vm4, %v632_v37  ;;  %v1134_v37 = vld [vmem:[%s3563_s11 + $0x8] sm:$0xff] }
 0x684   :  { %2798 = vmatpush3.msra.mxu1 %v803_v39  ;;  %2799 = vmatprep.mubr.msk.f32.mxu1 %vm3038_vm2, %v3037_v34  ;;  %v2590_v39 = vld [vmem:[%s3562_s10] ss:$0 sm:$0xff] }
 0x687   :  { %2800 = vmatmul.mubr.msk.f32.vlgmr.msra.gmra.mxu1 %vm280_vm4, %v801_v40 }
 0x73f   :  { %v533_v44 = vpop.f32.mrf.mxu1 }
 0x740   :  { %538 = vrot.lane.b32.xlu1 %v533_v44, %s3044_s26 }
 0x741   :  { %v2781_v46 = vpop.f32.mrf.mxu1 }
 0x743   :  { %v705_v47 = vpop.f32.mrf.mxu1 }
 0x744   :  { %709 = vst.msk [vmem:[#allocation3 + $0x8] sm:$0xff] %vm204_vm3, %v705_v47 }
 0x745   :  { %v2791_v48 = vpop.f32.mrf.mxu1 }
 0x747   :  { %v874_v49 = vpop.f32.mrf.mxu1 }
 0x748   :  { %879 = vrot.lane.b32.xlu1 %v874_v49, %s3044_s26 }
 0x749   :  { %v2801_v50 = vpop.f32.mrf.mxu1 }
 0x7b2   :  { %v539_v51 = vpop.permute.xlu1 %538 }
 0x7b3   :  { %542 = vst.msk [vmem:[#allocation3] sm:$0xff] %vm541_vm5, %v539_v51 }
 0x7ba   :  { %v880_v52 = vpop.permute.xlu1 %879  ;;  %v883_v53 = vld [vmem:[#allocation3] sm:$0xff] }
 0x7bb   :  { %882 = vst.msk [vmem:[#allocation3 + $0x8] sm:$0xff] %vm541_vm5, %v880_v52  ;;  %2810 = vmatprep.mubr.msk.f32.mxu0 %vm61_vm0, %v883_v53 }
 0x7c2   :  { %v884_v54 = vld [vmem:[#allocation3 + $0x8] sm:$0xff] }
 0x7c3   :  { %2811 = vmatmul.mubr.msk.f32.vlgmr.msra.gmra.mxu0 %vm61_vm0, %v884_v54 }
 0x7c4   :  { %2825 = vmatpush3.msra.mxu0 %v1140_v28 }
 0x7c5   :  { %2826 = vmatprep.subr.mxu0 %v1139_v29 }
 0x7c6   :  { %2827 = vmatpush3.msra.mxu0 %v1139_v29 }
 0x7c7   :  { %2828 = vmatprep.subr.mxu0 %v1138_v30 }
 0x7c8   :  { %2829 = vmatpush3.msra.mxu0 %v1138_v30 }
 0x7c9   :  { %2830 = vmatprep.subr.mxu0 %v1137_v32 }
 0x7ca   :  { %2831 = vmatpush3.msra.mxu0 %v1137_v32  ;;  %v2597_v32 = vld [vmem:[%s3566_s14] ss:$0 sm:$0xff] }
 0x7cb   :  { %2832 = vmatprep.subr.mxu0 %v1136_v35 }
 0x7cc   :  { %2833 = vmatpush3.msra.mxu0 %v1136_v35 }
 0x7cd   :  { %2834 = vmatprep.subr.mxu0 %v1135_v36 }
 0x7ce   :  { %2835 = vmatpush3.msra.mxu0 %v1135_v36 }
 0x7cf   :  { %2836 = vmatprep.subr.mxu0 %v1134_v37 }
 0x7d0   :  { %2837 = vmatpush3.msra.mxu0 %v1134_v37 }
 0x7d1   :  { %2838 = vmatprep.subr.mxu0 %v1133_v38 }
 0x7d2   :  { %2839 = vmatpush3.msra.mxu0 %v1133_v38  ;;  %v2603_v38 = vld [vmem:[%s3556_s4 + $0x1] ss:$0 sm:$0xff] }
 0x7d3   :  { %2864 = vmatprep.subr.mxu0 %v3037_v34 }
 0x883   :  { %v2812_v56 = vpop.f32.mrf.mxu0 }
 0x884   :  { %v974_v57 = vadd.f32 %v2812_v56, %v2585_v55 }
 0x885   :  { %v968_v58 = vpop.f32.mrf.mxu0 }
 0x886   :  { %v969_v59 = vadd.f32 %v2585_v55, %v968_v58  ;;  %v978_v60 = vadd.f32 %v974_v57, %v3168_v33 }
 0x888   :  { %v984_v61 = vsel %vm61_vm0, %v978_v60, 0.0  ;;  %v977_v62 = vadd.f32 %v969_v59, %v3164_v31  ;;  %v1026_v31 = vld [vmem:[%s3561_s9 + $0x18] sm:$0xff] }
 0x889   :  { %985 = vadd.xlane.f32.xlu1 %v984_v61  ;;  %2813 = vmatprep.subr.mxu1 %v1026_v31 }
 0x88a   :  { %v981_v63 = vsel %vm61_vm0, %v977_v62, 0.0  ;;  %2814 = vmatpush3.msra.mxu1 %v1026_v31 }
 0x88b   :  { %982 = vadd.xlane.f32.xlu0 %v981_v63  ;;  %2815 = vmatprep.subr.mxu1 %v1025_v9 }
 0x88c   :  { %2816 = vmatpush3.msra.mxu1 %v1025_v9 }
 0x88d   :  { %2817 = vmatprep.subr.mxu1 %v1024_v10 }
 0x88e   :  { %2818 = vmatpush3.msra.mxu1 %v1024_v10 }
 0x88f   :  { %2819 = vmatprep.subr.mxu1 %v1023_v11 }
 0x890   :  { %2820 = vmatpush3.msra.mxu1 %v1023_v11 }
 0x912   :  { %v986_v0 = vpop.xlane.xlu1 %985 }
 0x913   :  { %v988_v1 = vmul.f32 0.03125, %v986_v0 }
 0x914   :  { %v983_v2 = vpop.xlane.xlu0 %982 }
 0x915   :  { %v987_v3 = vmul.f32 0.03125, %v983_v2  ;;  %v990_v4 = vsub.f32 %v978_v60, %v988_v1 }
 0x917   :  { %v989_v5 = vsub.f32 %v977_v62, %v987_v3  ;;  %v992_v8 = vmul.f32 %v990_v4, %v990_v4  ;;  %v2593_v62 = vld [vmem:[%s3564_s12] ss:$0 sm:$0xff] }
 0x919   :  { %v991_v6 = vmul.f32 %v989_v5, %v989_v5  ;;  %v996_v33 = vsel %vm61_vm0, %v992_v8, 0.0 }
 0x91b   :  { %v993_v7 = vsel %vm61_vm0, %v991_v6, 0.0 }
 0x91c   :  { %994 = vadd.xlane.f32.xlu0 %v993_v7 }
 0x920   :  { %997 = vadd.xlane.f32.xlu0 %v996_v33 }
 0x9a5   :  { %v995_v12 = vpop.xlane.xlu0 %994 }
 0x9a6   :  { %v999_v13 = vmul.f32 0.03125, %v995_v12 }
 0x9a8   :  { %v1001_v14 = vadd.f32 1e-05, %v999_v13 }
 0x9a9   :  { %v998_v15 = vpop.xlane.xlu0 %997 }
 0x9aa   :  { %2975 = vrsqrt.f32 %v1001_v14  ;;  %v1000_v16 = vmul.f32 0.03125, %v998_v15  ;;  %v2601_v15 = vld [vmem:[%s3555_s3 + $0x38] sm:$0xff] }
 0x9ab   :  { %2843 = vmatprep.subr.mxu1 %v2601_v15 }
 0x9ac   :  { %v1002_v17 = vadd.f32 1e-05, %v1000_v16  ;;  %v2600_v16 = vld [vmem:[%s3555_s3 + $0x30] sm:$0xff] }
 0x9ae   :  { %2977 = vrsqrt.f32 %v1002_v17  ;;  %v2599_v17 = vld [vmem:[%s3555_s3 + $0x28] sm:$0xff] }
 0x9b7   :  { %v2976_v18 = vpop.eup %2975 }
 0x9b8   :  { %v1005_v20 = vmul.f32 %v2976_v18, %v989_v5  ;;  %v2598_v18 = vld [vmem:[%s3555_s3 + $0x20] sm:$0xff] }
 0x9ba   :  { %v1013_v22 = vmul.f32 %v2588_v19, %v1005_v20 }
 0x9bb   :  { %v2978_v23 = vpop.eup %2977 }
 0x9bc   :  { %v1006_v24 = vmul.f32 %v2978_v23, %v990_v4  ;;  %v3294_v25 = vadd.f32 %v2589_v21, %v1013_v22 }
 0x9be   :  { %v1014_v26 = vmul.f32 %v2588_v19, %v1006_v24  ;;  %2821 = vmatprep.mubr.msk.f32.mxu1 %vm61_vm0, %v3294_v25 }
 0x9c0   :  { %v1022_v27 = vadd.f32 %v2589_v21, %v1014_v26  ;;  %v2596_v26 = vld [vmem:[%s3565_s13] ss:$0 sm:$0xff] }
 0x9c2   :  { %2822 = vmatmul.mubr.msk.f32.vlgmr.msra.gmra.mxu1 %vm61_vm0, %v1022_v27 }
 0x9c3   :  { %2844 = vmatpush3.msra.mxu1 %v2601_v15 }
 0x9c4   :  { %2845 = vmatprep.subr.mxu1 %v2600_v16 }
 0x9c5   :  { %2846 = vmatpush3.msra.mxu1 %v2600_v16 }
 0x9c6   :  { %2847 = vmatprep.subr.mxu1 %v2599_v17 }
 0x9c7   :  { %2848 = vmatpush3.msra.mxu1 %v2599_v17 }
 0x9c8   :  { %2849 = vmatprep.subr.mxu1 %v2598_v18 }
 0x9c9   :  { %2850 = vmatpush3.msra.mxu1 %v2598_v18 }
 0x9ca   :  { %2854 = vmatprep.subr.mxu1 %v3037_v34 }
 0xa82   :  { %v2823_v40 = vpop.f32.mrf.mxu1 }
 0xa83   :  { %v1112_v41 = vadd.f32 %v2823_v40, %v2590_v39 }
 0xa84   :  { %v1106_v42 = vpop.f32.mrf.mxu1 }
 0xa85   :  { %v1116_v43 = vmul.f32 %v1112_v41, %v1112_v41  ;;  %v1107_v44 = vadd.f32 %v2590_v39, %v1106_v42 }
 0xa87   :  { %v1118_v45 = vmul.f32 %v1116_v43, %v1112_v41  ;;  %v1115_v46 = vmul.f32 %v1107_v44, %v1107_v44 }
 0xa89   :  { %v1120_v47 = vmul.f32 0.044715, %v1118_v45  ;;  %v1117_v48 = vmul.f32 %v1115_v46, %v1107_v44 }
 0xa8b   :  { %v1122_v49 = vadd.f32 %v1120_v47, %v1112_v41  ;;  %v1119_v50 = vmul.f32 0.044715, %v1117_v48 }
 0xa8d   :  { %v1124_v51 = vmul.f32 0.7978846, %v1122_v49  ;;  %v1121_v52 = vadd.f32 %v1119_v50, %v1107_v44 }
 0xa8f   :  { %2979 = vtanh.f32 %v1124_v51  ;;  %v1123_v53 = vmul.f32 0.7978846, %v1121_v52 }
 0xa91   :  { %2981 = vtanh.f32 %v1123_v53 }
 0xa9c   :  { %v2980_v54 = vpop.eup %2979 }
 0xa9d   :  { %v1128_v55 = vadd.f32 1.0, %v2980_v54 }
 0xa9e   :  { %v2982_v56 = vpop.eup %2981 }
 0xa9f   :  { %v1127_v57 = vadd.f32 1.0, %v2982_v56  ;;  %v1130_v58 = vmul.f32 0.5, %v1128_v55 }
 0xaa1   :  { %v1129_v59 = vmul.f32 0.5, %v1127_v57  ;;  %v1132_v61 = vmul.f32 %v1130_v58, %v1112_v41 }
 0xaa3   :  { %v1131_v60 = vmul.f32 %v1129_v59, %v1107_v44 }
 0xaa5   :  { %2840 = vmatprep.mubr.msk.f32.mxu0 %vm1148_vm6, %v1131_v60 }
 0xaa6   :  { %2841 = vmatmul.mubr.msk.f32.vlgmr.msra.gmra.mxu0 %vm1148_vm6, %v1132_v61 }
 0xaa7   :  { %2866 = vmatprep.mubr.msk.f32.mxu0 %vm3038_vm2, %v3037_v34 }
 0xb66   :  { %v2842_v63 = vpop.f32.mrf.mxu0 }
 0xb67   :  { %v1227_v0 = vadd.f32 %v2842_v63, %v2593_v62 }
 0xb68   :  { %v1221_v1 = vpop.f32.mrf.mxu0 }
 0xb69   :  { %v1222_v2 = vadd.f32 %v2593_v62, %v1221_v1  ;;  %v1231_v3 = vadd.f32 %v1227_v0, %v1022_v27 }
 0xb6b   :  { %v1237_v4 = vsel %vm61_vm0, %v1231_v3, 0.0  ;;  %v1230_v5 = vadd.f32 %v1222_v2, %v3294_v25 }
 0xb6c   :  { %1238 = vadd.xlane.f32.xlu1 %v1237_v4 }
 0xb6d   :  { %v1234_v6 = vsel %vm61_vm0, %v1230_v5, 0.0 }
 0xb6e   :  { %1235 = vadd.xlane.f32.xlu0 %v1234_v6 }
 0xbf5   :  { %v1239_v7 = vpop.xlane.xlu1 %1238 }
 0xbf6   :  { %v1241_v8 = vmul.f32 0.03125, %v1239_v7 }
 0xbf7   :  { %v1236_v33 = vpop.xlane.xlu0 %1235 }
 0xbf8   :  { %v1243_v31 = vsub.f32 %v1231_v3, %v1241_v8  ;;  %v1240_v9 = vmul.f32 0.03125, %v1236_v33 }
 0xbfa   :  { %v1242_v10 = vsub.f32 %v1230_v5, %v1240_v9  ;;  %v1245_v11 = vmul.f32 %v1243_v31, %v1243_v31 }
 0xbfc   :  { %v1249_v12 = vsel %vm61_vm0, %v1245_v11, 0.0  ;;  %v1244_v13 = vmul.f32 %v1242_v10, %v1242_v10 }
 0xbfd   :  { %1250 = vadd.xlane.f32.xlu1 %v1249_v12 }
 0xbfe   :  { %v1246_v14 = vsel %vm61_vm0, %v1244_v13, 0.0 }
 0xbff   :  { %1247 = vadd.xlane.f32.xlu0 %v1246_v14 }
 0xc86   :  { %v1251_v19 = vpop.xlane.xlu1 %1250 }
 0xc87   :  { %v1253_v20 = vmul.f32 0.03125, %v1251_v19 }
 0xc88   :  { %v1248_v21 = vpop.xlane.xlu0 %1247 }
 0xc89   :  { %v1255_v22 = vadd.f32 1e-05, %v1253_v20  ;;  %v1252_v23 = vmul.f32 0.03125, %v1248_v21 }
 0xc8b   :  { %2983 = vrsqrt.f32 %v1255_v22  ;;  %v1254_v24 = vadd.f32 1e-05, %v1252_v23 }
 0xc8d   :  { %2985 = vrsqrt.f32 %v1254_v24 }
 0xc98   :  { %v2984_v25 = vpop.eup %2983 }
 0xc99   :  { %v1259_v27 = vmul.f32 %v2984_v25, %v1243_v31 }
 0xc9a   :  { %v2986_v28 = vpop.eup %2985 }
 0xc9b   :  { %v1258_v29 = vmul.f32 %v2986_v28, %v1242_v10  ;;  %v1267_v30 = vmul.f32 %v2596_v26, %v1259_v27 }
 0xc9d   :  { %v1266_v35 = vmul.f32 %v2596_v26, %v1258_v29  ;;  %v3360_v37 = vadd.f32 %v2597_v32, %v1267_v30 }
 0xc9f   :  { %v3358_v36 = vadd.f32 %v2597_v32, %v1266_v35 }
 0xca1   :  { %2851 = vmatprep.mubr.msk.f32.mxu1 %vm61_vm0, %v3358_v36 }
 0xca2   :  { %2852 = vmatmul.mubr.msk.f32.vlgmr.msra.gmra.mxu1 %vm61_vm0, %v3360_v37 }
 0xca3   :  { %2856 = vmatprep.mubr.msk.f32.mxu1 %vm3038_vm2, %v3037_v34 }
 0xd62   :  { %v2853_v39 = vpop.f32.mrf.mxu1 }
 0xd63   :  { %v1367_v40 = vadd.f32 %v2853_v39, %v2603_v38 }
 0xd64   :  { %v1361_v41 = vpop.f32.mrf.mxu1 }
 0xd65   :  { %1371 = vst.msk [vmem:[#allocation2 + $0x8] sm:$0xff] %vm197_vm1, %v1367_v40  ;;  %v1362_v42 = vadd.f32 %v2603_v38, %v1361_v41 }
 0xd67   :  { %1370 = vst.msk [vmem:[#allocation2] sm:$0xff] %vm197_vm1, %v1362_v42 }
 0xd6c   :  { %v3379_v44 = vld [vmem:[#allocation2 + $0x8] sm:$0xff] }
 0xd6e   :  { %v3373_v43 = vld [vmem:[#allocation2] sm:$0xff] }
 0xd6f   :  { %1543 = vrot.lane.b32.xlu1 %v3373_v43, %s3040_s29  ;;  %1374 = vrot.lane.b32.xlu0 %v3373_v43, %s3039_s28 }
 0xd73   :  { %1541 = vrot.lane.b32.xlu1 %v3373_v43, %s3041_s0  ;;  %1883 = vrot.lane.b32.xlu0 %v3379_v44, %s3040_s29 }
 0xd77   :  { %1714 = vrot.lane.b32.xlu1 %v3379_v44, %s3039_s28 }
 0xd7b   :  { %1881 = vrot.lane.b32.xlu1 %v3379_v44, %s3041_s0 }
 0xde1   :  { %v1544_v45 = vpop.permute.xlu1 %1543  ;;  %v1375_v46 = vpop.permute.xlu0 %1374 }
 0xde2   :  { %2855 = vmatpush3.xpose.msk.msra.mxu1 %vm204_vm3, %v1375_v46  ;;  %2865 = vmatpush3.xpose.msk.msra.mxu0 %vm204_vm3, %v1544_v45 }
 0xde3   :  { %2874 = vmatprep.subr.mxu0 %v3037_v34  ;;  %2859 = vmatprep.subr.mxu1 %v3037_v34 }
 0xde5   :  { %v1542_v47 = vpop.permute.xlu1 %1541  ;;  %2857 = vmatmul.mubr.msk.f32.vlgmr.msra.gmra.mxu1 %vm204_vm3, %v3373_v43  ;;  %v1884_v49 = vpop.permute.xlu0 %1883 }
 0xde6   :  { %2867 = vmatmul.mubr.msk.f32.vlgmr.msra.gmra.mxu0 %vm204_vm3, %v1542_v47  ;;  %2861 = vmatprep.mubr.msk.f32.mxu1 %vm3038_vm2, %v3037_v34  ;;  %v2621_v47 = vld [vmem:[%s3557_s5 + $0x38] sm:$0xff] }
 0xde7   :  { %2876 = vmatprep.mubr.msk.f32.mxu0 %vm3038_vm2, %v3037_v34 }
 0xde9   :  { %v1715_v48 = vpop.permute.xlu1 %1714 }
 0xdea   :  { %2875 = vmatpush3.xpose.msk.msra.mxu0 %vm204_vm3, %v1715_v48  ;;  %v2620_v48 = vld [vmem:[%s3557_s5 + $0x30] sm:$0xff] }
 0xdeb   :  { %2884 = vmatprep.subr.mxu0 %v3037_v34 }
 0xded   :  { %2877 = vmatmul.mubr.msk.f32.vlgmr.msra.gmra.mxu0 %vm204_vm3, %v3379_v44  ;;  %v1882_v50 = vpop.permute.xlu1 %1881 }
 0xdee   :  { %2885 = vmatpush3.xpose.msk.msra.mxu0 %vm204_vm3, %v1884_v49  ;;  %2886 = vmatprep.mubr.msk.f32.mxu0 %vm3038_vm2, %v3037_v34  ;;  %v2619_v49 = vld [vmem:[%s3557_s5 + $0x28] sm:$0xff] }
 0xdef   :  { %2894 = vmatprep.subr.mxu0 %v2621_v47 }
 0xdf1   :  { %2887 = vmatmul.mubr.msk.f32.vlgmr.msra.gmra.mxu0 %vm204_vm3, %v1882_v50  ;;  %v2618_v50 = vld [vmem:[%s3557_s5 + $0x20] sm:$0xff] }
 0xdf2   :  { %2895 = vmatpush3.msra.mxu0 %v2621_v47 }
 0xdf3   :  { %2896 = vmatprep.subr.mxu0 %v2620_v48 }
 0xdf4   :  { %2897 = vmatpush3.msra.mxu0 %v2620_v48 }
 0xdf5   :  { %2898 = vmatprep.subr.mxu0 %v2619_v49 }
 0xdf6   :  { %2899 = vmatpush3.msra.mxu0 %v2619_v49 }
 0xdf7   :  { %2900 = vmatprep.subr.mxu0 %v2618_v50 }
 0xdf8   :  { %2901 = vmatpush3.msra.mxu0 %v2618_v50 }
 0xea5   :  { %v1446_v51 = vpop.f32.mrf.mxu1 }
 0xea6   :  { %v1450_v52 = vmul.f32 0.25, %v1446_v51  ;;  %v1615_v53 = vpop.f32.mrf.mxu0 }
 0xea7   :  { %v1619_v54 = vmul.f32 0.25, %v1615_v53  ;;  %v2858_v55 = vpop.f32.mrf.mxu1 }
 0xea8   :  { %v2868_v56 = vpop.f32.mrf.mxu0  ;;  %v1451_v57 = vsel %vm280_vm4, %v1450_v52, -inf }
 0xea9   :  { %1452 = vmax.xlane.f32.xlu0 %v1451_v57  ;;  %v1620_v58 = vsel %vm280_vm4, %v1619_v54, -inf  ;;  %v2623_v57 = vld [vmem:[%s3558_s6 + $0x1] ss:$0 sm:$0xff] }
 0xeaa   :  { %1621 = vmax.xlane.f32.xlu1 %v1620_v58 }
 0xead   :  { %v1786_v59 = vpop.f32.mrf.mxu0 }
 0xeae   :  { %v1790_v60 = vmul.f32 0.25, %v1786_v59 }
 0xeaf   :  { %v2878_v61 = vpop.f32.mrf.mxu0 }
 0xeb0   :  { %v1791_v62 = vsel %vm280_vm4, %v1790_v60, -inf }
 0xeb1   :  { %1792 = vmax.xlane.f32.xlu0 %v1791_v62  ;;  %v1955_v63 = vpop.f32.mrf.mxu0 }
 0xeb2   :  { %v1959_v0 = vmul.f32 0.25, %v1955_v63 }
 0xeb3   :  { %v2888_v1 = vpop.f32.mrf.mxu0 }
 0xeb4   :  { %v1960_v2 = vsel %vm280_vm4, %v1959_v0, -inf }
 0xeb5   :  { %1961 = vmax.xlane.f32.xlu0 %v1960_v2 }
 0xf32   :  { %v1453_v3 = vpop.xlane.xlu0 %1452 }
 0xf33   :  { %v1454_v4 = vsub.f32 %v1450_v52, %v1453_v3  ;;  %v1622_v5 = vpop.xlane.xlu1 %1621 }
 0xf34   :  { %v1623_v6 = vsub.f32 %v1619_v54, %v1622_v5 }
 0xf35   :  { %v1455_v7 = vmul.f32 1.442695, %v1454_v4 }
 0xf36   :  { %v1624_v8 = vmul.f32 1.442695, %v1623_v6 }
 0xf37   :  { %2987 = vpow2.f32 %v1455_v7 }
 0xf38   :  { %2989 = vpow2.f32 %v1624_v8 }
 0xf3a   :  { %v1793_v33 = vpop.xlane.xlu0 %1792 }
 0xf3b   :  { %v1794_v31 = vsub.f32 %v1790_v60, %v1793_v33 }
 0xf3d   :  { %v1795_v9 = vmul.f32 1.442695, %v1794_v31 }
 0xf3e   :  { %v1962_v16 = vpop.xlane.xlu0 %1961 }
 0xf3f   :  { %2991 = vpow2.f32 %v1795_v9  ;;  %v1963_v17 = vsub.f32 %v1959_v0, %v1962_v16  ;;  %v2632_v9 = vld [vmem:[%s3561_s9 + $0x30] sm:$0xff] }
 0xf41   :  { %v1964_v18 = vmul.f32 1.442695, %v1963_v17 }
 0xf43   :  { %2993 = vpow2.f32 %v1964_v18 }
 0xf44   :  { %v2988_v10 = vpop.eup %2987 }
 0xf45   :  { %v2990_v11 = vpop.eup %2989  ;;  %v1457_v12 = vsel %vm280_vm4, %v2988_v10, 0.0 }
 0xf46   :  { %1458 = vadd.xlane.f32.xlu0 %v1457_v12  ;;  %v1626_v13 = vsel %vm280_vm4, %v2990_v11, 0.0 }
 0xf47   :  { %1627 = vadd.xlane.f32.xlu1 %v1626_v13 }
 0xf4c   :  { %v2992_v14 = vpop.eup %2991 }
 0xf4d   :  { %v1797_v15 = vsel %vm280_vm4, %v2992_v14, 0.0 }
 0xf4e   :  { %1798 = vadd.xlane.f32.xlu0 %v1797_v15 }
 0xf50   :  { %v2994_v19 = vpop.eup %2993 }
 0xf51   :  { %v1966_v20 = vsel %vm280_vm4, %v2994_v19, 0.0 }
 0xf58   :  { %1631 = vrot.lane.b32.xlu1 %v3373_v43, %s3043_s18 }
 0xf5c   :  { %1802 = vrot.lane.b32.xlu1 %v3379_v44, %s3042_s30 }
 0xf64   :  { %1462 = vrot.lane.b32.xlu0 %v3373_v43, %s3042_s30 }
 0xf80   :  { %1967 = vadd.xlane.f32.xlu1 %v1966_v20 }
 0xf91   :  { %1971 = vrot.lane.b32.xlu1 %v3379_v44, %s3043_s18 }
 0xfcf   :  { %v1459_v21 = vpop.xlane.xlu0 %1458 }
 0xfd0   :  { %2995 = vrcp.f32 %v1459_v21  ;;  %v1628_v22 = vpop.xlane.xlu1 %1627  ;;  %v2629_v21 = vld [vmem:[%s3560_s8 + $0x1] ss:$0 sm:$0xff] }
 0xfd1   :  { %2997 = vrcp.f32 %v1628_v22 }
 0xfd4   :  { %v1632_v26 = vpop.permute.xlu1 %1631 }
 0xfd7   :  { %v1799_v23 = vpop.xlane.xlu0 %1798 }
 0xfd8   :  { %2999 = vrcp.f32 %v1799_v23  ;;  %v1803_v30 = vpop.permute.xlu1 %1802 }
 0xfdb   :  { %v1463_v24 = vpop.permute.xlu0 %1462 }
 0xfdc   :  { %2860 = vmatpush3.msra.mxu1 %v1463_v24 }
 0xfdd   :  { %v2996_v25 = vpop.eup %2995  ;;  %2869 = vmatprep.subr.mxu1 %v3037_v34 }
 0xfde   :  { %v1461_v27 = vmul.f32 %v2996_v25, %v2988_v10  ;;  %v2998_v28 = vpop.eup %2997  ;;  %v2631_v10 = vld [vmem:[%s3561_s9 + $0x28] sm:$0xff] }
 0xfdf   :  { %v1630_v29 = vmul.f32 %v2998_v28, %v2990_v11  ;;  %v2630_v11 = vld [vmem:[%s3561_s9 + $0x20] sm:$0xff]  ;;  %v2645_v28 = vld [vmem:[%s3563_s11 + $0x78] sm:$0xff] }
 0xfe0   :  { %2862 = vmatmul.mubr.msk.f32.vlgmr.msra.gmra.mxu1 %vm280_vm4, %v1461_v27  ;;  %2916 = vmatprep.subr.mxu0 %v2645_v28 }
 0xfe1   :  { %2870 = vmatpush3.msra.mxu1 %v1632_v26  ;;  %2871 = vmatprep.mubr.msk.f32.mxu1 %vm3038_vm2, %v3037_v34 }
 0xfe2   :  { %2879 = vmatprep.subr.mxu1 %v3037_v34 }
 0xfe4   :  { %2872 = vmatmul.mubr.msk.f32.vlgmr.msra.gmra.mxu1 %vm280_vm4, %v1630_v29  ;;  %v2644_v29 = vld [vmem:[%s3563_s11 + $0x70] sm:$0xff] }
 0xfe5   :  { %v3000_v32 = vpop.eup %2999  ;;  %2880 = vmatpush3.msra.mxu1 %v1803_v30  ;;  %2881 = vmatprep.mubr.msk.f32.mxu1 %vm3038_vm2, %v3037_v34  ;;  %v2643_v30 = vld [vmem:[%s3563_s11 + $0x68] sm:$0xff] }
 0xfe6   :  { %v1801_v35 = vmul.f32 %v3000_v32, %v2992_v14  ;;  %2889 = vmatprep.subr.mxu1 %v3037_v34  ;;  %v2642_v32 = vld [vmem:[%s3563_s11 + $0x60] sm:$0xff] }
 0xfe8   :  { %2882 = vmatmul.mubr.msk.f32.vlgmr.msra.gmra.mxu1 %vm280_vm4, %v1801_v35  ;;  %v2641_v35 = vld [vmem:[%s3563_s11 + $0x58] sm:$0xff] }
 0xfe9   :  { %2891 = vmatprep.mubr.msk.f32.mxu1 %vm3038_vm2, %v3037_v34 }
0x1009   :  { %v1968_v38 = vpop.xlane.xlu1 %1967 }
0x100a   :  { %3001 = vrcp.f32 %v1968_v38  ;;  %v2640_v38 = vld [vmem:[%s3563_s11 + $0x50] sm:$0xff] }
0x100d   :  { %v1972_v39 = vpop.permute.xlu1 %1971 }
0x100e   :  { %2890 = vmatpush3.msra.mxu1 %v1972_v39  ;;  %v2639_v39 = vld [vmem:[%s3563_s11 + $0x48] sm:$0xff] }
0x1017   :  { %v3002_v40 = vpop.eup %3001 }
0x1018   :  { %v1970_v41 = vmul.f32 %v3002_v40, %v2994_v19  ;;  %v2628_v19 = vld [vmem:[%s3559_s7 + $0x1] ss:$0 sm:$0xff] }
0x1019   :  { %v2638_v40 = vld [vmem:[%s3563_s11 + $0x40] sm:$0xff] }
0x101a   :  { %2892 = vmatmul.mubr.msk.f32.vlgmr.msra.gmra.mxu1 %vm280_vm4, %v1970_v41  ;;  %v2635_v41 = vld [vmem:[%s3562_s10 + $0x1] ss:$0 sm:$0xff] }
0x10a0   :  { %v1534_v42 = vpop.f32.mrf.mxu1 }
0x10a1   :  { %1538 = vst.msk [vmem:[#allocation3] sm:$0xff] %vm204_vm3, %v1534_v42 }
0x10a2   :  { %v2863_v43 = vpop.f32.mrf.mxu1 }
0x10a4   :  { %v1703_v44 = vpop.f32.mrf.mxu1 }
0x10a5   :  { %1708 = vrot.lane.b32.xlu0 %v1703_v44, %s3044_s26 }
0x10a6   :  { %v2873_v45 = vpop.f32.mrf.mxu1 }
0x10a8   :  { %v1874_v46 = vpop.f32.mrf.mxu1 }
0x10a9   :  { %1878 = vst.msk [vmem:[#allocation3 + $0x8] sm:$0xff] %vm204_vm3, %v1874_v46 }
0x10aa   :  { %v2883_v34 = vpop.f32.mrf.mxu1 }
0x10da   :  { %v2043_v51 = vpop.f32.mrf.mxu1 }
0x10db   :  { %2048 = vrot.lane.b32.xlu1 %v2043_v51, %s3044_s26 }
0x10dc   :  { %v2893_v52 = vpop.f32.mrf.mxu1 }
0x1117   :  { %v1709_v53 = vpop.permute.xlu0 %1708 }
0x1118   :  { %1711 = vst.msk [vmem:[#allocation3] sm:$0xff] %vm541_vm5, %v1709_v53 }
0x111f   :  { %v2052_v54 = vld [vmem:[#allocation3] sm:$0xff] }
0x1120   :  { %2902 = vmatprep.mubr.msk.f32.mxu0 %vm61_vm0, %v2052_v54 }
0x114d   :  { %v2049_v55 = vpop.permute.xlu1 %2048 }
0x114e   :  { %2051 = vst.msk [vmem:[#allocation3 + $0x8] sm:$0xff] %vm541_vm5, %v2049_v55 }
0x1155   :  { %v2053_v56 = vld [vmem:[#allocation3 + $0x8] sm:$0xff] }
0x1156   :  { %2903 = vmatmul.mubr.msk.f32.vlgmr.msra.gmra.mxu0 %vm61_vm0, %v2053_v56 }
0x1157   :  { %2917 = vmatpush3.msra.mxu0 %v2645_v28 }
0x1158   :  { %2918 = vmatprep.subr.mxu0 %v2644_v29 }
0x1159   :  { %2919 = vmatpush3.msra.mxu0 %v2644_v29 }
0x115a   :  { %2920 = vmatprep.subr.mxu0 %v2643_v30 }
0x115b   :  { %2921 = vmatpush3.msra.mxu0 %v2643_v30  ;;  %v2653_v30 = vld [vmem:[%s3566_s14 + $0x1] ss:$0 sm:$0xff] }
0x115c   :  { %2922 = vmatprep.subr.mxu0 %v2642_v32 }
0x115d   :  { %2923 = vmatpush3.msra.mxu0 %v2642_v32 }
0x115e   :  { %2924 = vmatprep.subr.mxu0 %v2641_v35 }
0x115f   :  { %2925 = vmatpush3.msra.mxu0 %v2641_v35 }
0x1160   :  { %2926 = vmatprep.subr.mxu0 %v2640_v38 }
0x1161   :  { %2927 = vmatpush3.msra.mxu0 %v2640_v38 }
0x1162   :  { %2928 = vmatprep.subr.mxu0 %v2639_v39 }
0x1163   :  { %2929 = vmatpush3.msra.mxu0 %v2639_v39  ;;  %v2654_v39 = vld [vmem:[%s3568_s16] ss:$0 sm:$0xff] }
0x1164   :  { %2930 = vmatprep.subr.mxu0 %v2638_v40 }
0x1165   :  { %2931 = vmatpush3.msra.mxu0 %v2638_v40 }
0x1216   :  { %v2904_v58 = vpop.f32.mrf.mxu0 }
0x1217   :  { %v2145_v59 = vadd.f32 %v2904_v58, %v2623_v57 }
0x1218   :  { %v2139_v60 = vpop.f32.mrf.mxu0 }
0x1219   :  { %v2140_v61 = vadd.f32 %v2623_v57, %v2139_v60  ;;  %v2149_v62 = vadd.f32 %v2145_v59, %v3360_v37 }
0x121b   :  { %v2157_v63 = vsel %vm61_vm0, %v2149_v62, 0.0  ;;  %v2148_v0 = vadd.f32 %v2140_v61, %v3358_v36  ;;  %v2633_v36 = vld [vmem:[%s3561_s9 + $0x38] sm:$0xff] }
0x121c   :  { %2158 = vadd.xlane.f32.xlu1 %v2157_v63  ;;  %2905 = vmatprep.subr.mxu1 %v2633_v36  ;;  %v2647_v63 = vld [vmem:[%s3564_s12 + $0x1] ss:$0 sm:$0xff] }
0x121d   :  { %v2154_v1 = vsel %vm61_vm0, %v2148_v0, 0.0  ;;  %2906 = vmatpush3.msra.mxu1 %v2633_v36 }
0x121e   :  { %2155 = vadd.xlane.f32.xlu0 %v2154_v1  ;;  %2907 = vmatprep.subr.mxu1 %v2632_v9 }
0x121f   :  { %2908 = vmatpush3.msra.mxu1 %v2632_v9 }
0x1220   :  { %2909 = vmatprep.subr.mxu1 %v2631_v10 }
0x1221   :  { %2910 = vmatpush3.msra.mxu1 %v2631_v10 }
0x1222   :  { %2911 = vmatprep.subr.mxu1 %v2630_v11 }
0x1223   :  { %2912 = vmatpush3.msra.mxu1 %v2630_v11 }
0x12a5   :  { %v2159_v2 = vpop.xlane.xlu1 %2158 }
0x12a6   :  { %v2161_v3 = vmul.f32 0.03125, %v2159_v2 }
0x12a7   :  { %v2156_v4 = vpop.xlane.xlu0 %2155 }
0x12a8   :  { %v2160_v5 = vmul.f32 0.03125, %v2156_v4  ;;  %v2163_v6 = vsub.f32 %v2149_v62, %v2161_v3 }
0x12aa   :  { %v2162_v7 = vsub.f32 %v2148_v0, %v2160_v5  ;;  %v2165_v31 = vmul.f32 %v2163_v6, %v2163_v6 }
0x12ac   :  { %v2164_v8 = vmul.f32 %v2162_v7, %v2162_v7  ;;  %v2169_v37 = vsel %vm61_vm0, %v2165_v31, 0.0 }
0x12ae   :  { %v2166_v33 = vsel %vm61_vm0, %v2164_v8, 0.0 }
0x12af   :  { %2167 = vadd.xlane.f32.xlu0 %v2166_v33 }
0x12b3   :  { %2170 = vadd.xlane.f32.xlu0 %v2169_v37 }
0x1338   :  { %v2168_v12 = vpop.xlane.xlu0 %2167 }
0x1339   :  { %v2172_v13 = vmul.f32 0.03125, %v2168_v12 }
0x133b   :  { %v2174_v14 = vadd.f32 1e-05, %v2172_v13 }
0x133c   :  { %v2171_v15 = vpop.xlane.xlu0 %2170 }
0x133d   :  { %3003 = vrsqrt.f32 %v2174_v14  ;;  %v2173_v16 = vmul.f32 0.03125, %v2171_v15  ;;  %v2457_v14 = vld [vmem:[%s3567_s15 + $0x18] sm:$0xff]  ;;  %v2456_v15 = vld [vmem:[%s3567_s15 + $0x10] sm:$0xff] }
0x133e   :  { %2935 = vmatprep.subr.mxu1 %v2457_v14 }
0x133f   :  { %v2175_v17 = vadd.f32 1e-05, %v2173_v16  ;;  %v2455_v16 = vld [vmem:[%s3567_s15 + $0x8] sm:$0xff] }
0x1341   :  { %3005 = vrsqrt.f32 %v2175_v17  ;;  %v2454_v17 = vld [vmem:[%s3567_s15] sm:$0xff] }
0x134a   :  { %v3004_v18 = vpop.eup %3003 }
0x134b   :  { %v2178_v20 = vmul.f32 %v3004_v18, %v2162_v7 }
0x134d   :  { %v2186_v22 = vmul.f32 %v2628_v19, %v2178_v20 }
0x134e   :  { %v3006_v23 = vpop.eup %3005 }
0x134f   :  { %v2179_v24 = vmul.f32 %v3006_v23, %v2163_v6  ;;  %v3484_v25 = vadd.f32 %v2629_v21, %v2186_v22 }
0x1351   :  { %v2187_v26 = vmul.f32 %v2628_v19, %v2179_v24  ;;  %2913 = vmatprep.mubr.msk.f32.mxu1 %vm61_vm0, %v3484_v25 }
0x1353   :  { %v2195_v27 = vadd.f32 %v2629_v21, %v2187_v26 }
0x1355   :  { %2914 = vmatmul.mubr.msk.f32.vlgmr.msra.gmra.mxu1 %vm61_vm0, %v2195_v27 }
0x1356   :  { %2936 = vmatpush3.msra.mxu1 %v2457_v14 }
0x1357   :  { %2937 = vmatprep.subr.mxu1 %v2456_v15 }
0x1358   :  { %2938 = vmatpush3.msra.mxu1 %v2456_v15 }
0x1359   :  { %2939 = vmatprep.subr.mxu1 %v2455_v16 }
0x135a   :  { %2940 = vmatpush3.msra.mxu1 %v2455_v16 }
0x135b   :  { %2941 = vmatprep.subr.mxu1 %v2454_v17 }
0x135c   :  { %2942 = vmatpush3.msra.mxu1 %v2454_v17 }
0x1415   :  { %v2915_v42 = vpop.f32.mrf.mxu1 }
0x1416   :  { %v2287_v43 = vadd.f32 %v2915_v42, %v2635_v41 }
0x1417   :  { %v2281_v44 = vpop.f32.mrf.mxu1 }
0x1418   :  { %v2291_v45 = vmul.f32 %v2287_v43, %v2287_v43  ;;  %v2282_v46 = vadd.f32 %v2635_v41, %v2281_v44 }
0x141a   :  { %v2293_v34 = vmul.f32 %v2291_v45, %v2287_v43  ;;  %v2290_v47 = vmul.f32 %v2282_v46, %v2282_v46 }
0x141c   :  { %v2295_v48 = vmul.f32 0.044715, %v2293_v34  ;;  %v2292_v49 = vmul.f32 %v2290_v47, %v2282_v46 }
0x141e   :  { %v2297_v50 = vadd.f32 %v2295_v48, %v2287_v43  ;;  %v2294_v51 = vmul.f32 0.044715, %v2292_v49 }
0x1420   :  { %v2299_v52 = vmul.f32 0.7978846, %v2297_v50  ;;  %v2296_v53 = vadd.f32 %v2294_v51, %v2282_v46 }
0x1422   :  { %3007 = vtanh.f32 %v2299_v52  ;;  %v2298_v54 = vmul.f32 0.7978846, %v2296_v53 }
0x1424   :  { %3009 = vtanh.f32 %v2298_v54 }
0x142f   :  { %v3008_v55 = vpop.eup %3007 }
0x1430   :  { %v2303_v56 = vadd.f32 1.0, %v3008_v55 }
0x1431   :  { %v3010_v57 = vpop.eup %3009 }
0x1432   :  { %v2302_v58 = vadd.f32 1.0, %v3010_v57  ;;  %v2305_v59 = vmul.f32 0.5, %v2303_v56 }
0x1434   :  { %v2304_v60 = vmul.f32 0.5, %v2302_v58  ;;  %v2307_v62 = vmul.f32 %v2305_v59, %v2287_v43 }
0x1436   :  { %v2306_v61 = vmul.f32 %v2304_v60, %v2282_v46 }
0x1438   :  { %2932 = vmatprep.mubr.msk.f32.mxu0 %vm1148_vm6, %v2306_v61 }
0x1439   :  { %2933 = vmatmul.mubr.msk.f32.vlgmr.msra.gmra.mxu0 %vm1148_vm6, %v2307_v62 }
0x14f9   :  { %v2934_v0 = vpop.f32.mrf.mxu0 }
0x14fa   :  { %v2403_v1 = vadd.f32 %v2934_v0, %v2647_v63 }
0x14fb   :  { %v2397_v2 = vpop.f32.mrf.mxu0 }
0x14fc   :  { %v2398_v3 = vadd.f32 %v2647_v63, %v2397_v2  ;;  %v2407_v4 = vadd.f32 %v2403_v1, %v2195_v27 }
0x14fe   :  { %v2415_v5 = vsel %vm61_vm0, %v2407_v4, 0.0  ;;  %v2406_v6 = vadd.f32 %v2398_v3, %v3484_v25  ;;  %v2652_v25 = vld [vmem:[%s3565_s13 + $0x1] ss:$0 sm:$0xff]  ;;  %s3045_s13 = smov [#allocation5]  }
0x14ff   :  { %2416 = vadd.xlane.f32.xlu1 %v2415_v5  ;;  %s2560_s14 = sshll.u32 %s3045_s13, 4  ;;  %s2561_s14 = int_to_ptr.vmem [resolvable:$true] %s2560_s14 }
0x1500   :  { %v2412_v7 = vsel %vm61_vm0, %v2406_v6, 0.0  ;;  %s3015_s23 = scalar_lea.vmem %s2561_s14, 32  ;;  %p3020_p1 = scmp.lt.s32.totalorder %s2561_s14, %s2561_s14 }
0x1501   :  { %2413 = vadd.xlane.f32.xlu0 %v2412_v7  ;;  %p3016_p0 = scmp.ne.s32.totalorder %s2561_s14, %s3015_s23  ;;  %p3021_p2 = scmp.lt.s32.totalorder %s3015_s23, %s3015_s23 }
0x1503   :  { %p3022_p3 = por %p3021_p2, %p3020_p1 }
0x1505   :  { %p3023_p4 = pnand %p3022_p3, %p3016_p0 }
0x1588   :  { %v2417_v8 = vpop.xlane.xlu1 %2416 }
0x1589   :  { %v2419_v33 = vmul.f32 0.03125, %v2417_v8 }
0x158a   :  { %v2414_v31 = vpop.xlane.xlu0 %2413 }
0x158b   :  { %v2421_v37 = vsub.f32 %v2407_v4, %v2419_v33  ;;  %v2418_v36 = vmul.f32 0.03125, %v2414_v31 }
0x158d   :  { %v2420_v9 = vsub.f32 %v2406_v6, %v2418_v36  ;;  %v2423_v10 = vmul.f32 %v2421_v37, %v2421_v37 }
0x158f   :  { %v2427_v11 = vsel %vm61_vm0, %v2423_v10, 0.0  ;;  %v2422_v12 = vmul.f32 %v2420_v9, %v2420_v9 }
0x1590   :  { %2428 = vadd.xlane.f32.xlu1 %v2427_v11 }
0x1591   :  { %v2424_v13 = vsel %vm61_vm0, %v2422_v12, 0.0 }
0x1592   :  { %2425 = vadd.xlane.f32.xlu0 %v2424_v13 }
0x1619   :  { %v2429_v18 = vpop.xlane.xlu1 %2428 }
0x161a   :  { %v2431_v19 = vmul.f32 0.03125, %v2429_v18 }
0x161b   :  { %v2426_v20 = vpop.xlane.xlu0 %2425 }
0x161c   :  { %v2433_v21 = vadd.f32 1e-05, %v2431_v19  ;;  %v2430_v22 = vmul.f32 0.03125, %v2426_v20 }
0x161e   :  { %3011 = vrsqrt.f32 %v2433_v21  ;;  %v2432_v23 = vadd.f32 1e-05, %v2430_v22 }
0x1620   :  { %3013 = vrsqrt.f32 %v2432_v23 }
0x162b   :  { %v3012_v24 = vpop.eup %3011 }
0x162c   :  { %v2437_v26 = vmul.f32 %v3012_v24, %v2421_v37 }
0x162d   :  { %v3014_v27 = vpop.eup %3013 }
0x162e   :  { %v2436_v28 = vmul.f32 %v3014_v27, %v2420_v9  ;;  %v2445_v29 = vmul.f32 %v2652_v25, %v2437_v26 }
0x1630   :  { %v2444_v32 = vmul.f32 %v2652_v25, %v2436_v28  ;;  %v2453_v38 = vadd.f32 %v2653_v30, %v2445_v29 }
0x1632   :  { %v2452_v35 = vadd.f32 %v2653_v30, %v2444_v32 }
0x1634   :  { %2943 = vmatprep.mubr.msk.f32.mxu1 %vm61_vm0, %v2452_v35 }
0x1635   :  { %2944 = vmatmul.mubr.msk.f32.vlgmr.msra.gmra.mxu1 %vm61_vm0, %v2453_v38 }
0x16f5   :  { %v2945_v40 = vpop.f32.mrf.mxu1 }
0x16f6   :  { %v2543_v41 = vadd.f32 %v2945_v40, %v2654_v39 }
0x16f7   :  { %v2537_v42 = vpop.f32.mrf.mxu1 }
0x16f8   :  { %2548 = vst.msk [vmem:[#allocation4 + $0x8] sm:$0xff] %vm2546_vm7, %v2543_v41  ;;  %v2538_v43 = vadd.f32 %v2654_v39, %v2537_v42 }
0x16fa   :  { %2547 = vst.msk [vmem:[#allocation4] sm:$0xff] %vm2546_vm7, %v2538_v43 }
0x16ff   :  { %v2552_v44 = vld [vmem:[#allocation4 + $0x8] sm:$0x1] }
0x1700   :  { %2553 = vst.msk [vmem:[#allocation5 + $0x1] sm:$0x1] %vm2550_vm8, %v2552_v44 }
0x1701   :  { %v2549_v45 = vld [vmem:[#allocation4] sm:$0x1] }
0x1702   :  { %2551 = vst.msk [vmem:[#allocation5] sm:$0x1] %vm2550_vm8, %v2549_v45 }
0x1703   :  { %3026 = shalt.err (!%p3023_p4)
}
0x1704   :  { %2563 = dma.vmem_to_hbm [thread:$0]  %s2561_s14, 32, %s3569_s17, [#allocation6]  }
0x1705   :  { %3035 = dma.done.wait [#allocation6], 32  }
0x1706   :  { %3036 = vsyncadd [#allocation6], 4294967264 }
0x1707   :  { %2567 = vsyncpa [#allocation6], 1 }

</bundles_post_ra>
